<compile_context>
chip_gen: v7x
topology: tpu7x:2x2x1
jax: 0.10.0
libtpu: 0.0.40
codegen_flags: <defaults>
</compile_context>

<pallas_src>
import math
import functools

import numpy as np
import jax
import jax.numpy as jnp
from jax.experimental import pallas as pl
from jax.experimental.pallas import tpu as pltpu

F32_EPS = float(jnp.finfo(jnp.float32).eps)  # matches torch.finfo(float32).eps in F.rms_norm

# Tile targets, re-derived for the smallest relevant budgets (v5e 16 MiB default
# scoped VMEM, v7x 64 MiB physical): every kernel below stays < ~6 MiB with
# double buffering, so no vmem_limit_bytes override is required.
_TM, _TN, _TK = 512, 512, 512     # matmul tiles (bf16 inputs, f32 accumulator)
_ROW_TILE = 256                   # rows per block for RMSNorm / fused qkv norm+rope
_TATTN = 256                      # flash-attention q/kv tile


def _tile(dim, target, step):
    """Largest tile <= target that divides `dim`, stepping down in multiples of
    `step` (8 for sublane dims, 128 for lane dims). Small dims use the full
    extent. This keeps per-block VMEM bounded (the old full-extent fallback made
    the lm_head weight block ~(tk, vocab) bf16 at real vocab sizes)."""
    if dim <= target:
        return dim
    t = (target // step) * step
    while t >= step:
        if dim % t == 0:
            return t
        t -= step
    # TODO(synk): pad + mask edge blocks for dims with no step-multiple divisor.
    return dim


# ----------------------------- tiled matmul ---------------------------------

def _matmul_kernel(x_ref, w_ref, o_ref, acc_ref):
    @pl.when(pl.program_id(2) == 0)
    def _():
        acc_ref[...] = jnp.zeros_like(acc_ref)
    acc_ref[...] += jnp.dot(x_ref[...], w_ref[...],
                            preferred_element_type=jnp.float32)

    @pl.when(pl.program_id(2) == pl.num_programs(2) - 1)
    def _():
        o_ref[...] = acc_ref[...].astype(o_ref.dtype)


def _matmul_bias_kernel(x_ref, w_ref, b_ref, o_ref, acc_ref):
    @pl.when(pl.program_id(2) == 0)
    def _():
        acc_ref[...] = jnp.zeros_like(acc_ref)
    acc_ref[...] += jnp.dot(x_ref[...], w_ref[...],
                            preferred_element_type=jnp.float32)

    @pl.when(pl.program_id(2) == pl.num_programs(2) - 1)
    def _():
        o_ref[...] = (acc_ref[...] + b_ref[...].astype(jnp.float32)).astype(o_ref.dtype)


def linear(x, w_t, b=None, out_dtype=jnp.float32):
    """y = x @ w_t (+ b). w_t is pre-transposed (K, N) bf16; bf16 MXU, f32 accum."""
    *lead, K = x.shape
    xs = x.reshape(-1, K).astype(jnp.bfloat16)
    M = xs.shape[0]
    Kw, N = w_t.shape
    assert Kw == K
    tm = _tile(M, _TM, 8)
    tn = _tile(N, _TN, 128)
    tk = _tile(K, _TK, 128)
    grid = (M // tm, N // tn, K // tk)
    x_spec = pl.BlockSpec((tm, tk), lambda i, j, k: (i, k))
    w_spec = pl.BlockSpec((tk, tn), lambda i, j, k: (k, j))
    common = dict(
        grid=grid,
        out_shape=jax.ShapeDtypeStruct((M, N), out_dtype),
        out_specs=pl.BlockSpec((tm, tn), lambda i, j, k: (i, j)),
        scratch_shapes=[pltpu.VMEM((tm, tn), jnp.float32)],
        compiler_params=pltpu.CompilerParams(
            dimension_semantics=("parallel", "parallel", "arbitrary")),
    )
    w_bf16 = w_t.astype(jnp.bfloat16)
    if b is None:
        out = pl.pallas_call(_matmul_kernel, in_specs=[x_spec, w_spec],
                             **common)(xs, w_bf16)
    else:
        b2 = b.reshape(1, N).astype(jnp.float32)
        b_spec = pl.BlockSpec((1, tn), lambda i, j, k: (0, j))
        out = pl.pallas_call(_matmul_bias_kernel, in_specs=[x_spec, w_spec, b_spec],
                             **common)(xs, w_bf16, b2)
    return out.reshape(*lead, N)


# ----------------------------- RMSNorm ---------------------------------------

def _rmsnorm_kernel(x_ref, o_ref):
    x = x_ref[...].astype(jnp.float32)
    ms = jnp.mean(x * x, axis=-1, keepdims=True)
    o_ref[...] = (x * jax.lax.rsqrt(ms + F32_EPS)).astype(o_ref.dtype)


def rms_norm(x, out_dtype=None):
    """F.rms_norm(x, (x.shape[-1],)) — no weight, eps = float32 eps. Row tiled."""
    shape = x.shape
    C = shape[-1]
    x2 = x.reshape(-1, C)
    M = x2.shape[0]
    tm = _tile(M, _ROW_TILE, 8)
    out = pl.pallas_call(
        _rmsnorm_kernel,
        out_shape=jax.ShapeDtypeStruct((M, C), out_dtype or x.dtype),
        grid=(M // tm,),
        in_specs=[pl.BlockSpec((tm, C), lambda i: (i, 0))],
        out_specs=pl.BlockSpec((tm, C), lambda i: (i, 0)),
        compiler_params=pltpu.CompilerParams(dimension_semantics=("parallel",)),
    )(x2)
    return out.reshape(shape)


# --------------- fused qkv -> per-head RMSNorm + rotary (Rotary) --------------

def rotary_cache(T, dim, base=10000.0):
    """Reproduces the PyTorch Rotary module cache (cos/sin of outer(t, inv_freq),
    stored in bf16) and pre-duplicates it to full head width so the kernel does
    y = xn*[c,c] + half_swap(xn)*[s,-s] with one full-width store per head."""
    inv_freq = 1.0 / (base ** (jnp.arange(0, dim, 2, dtype=jnp.float32) / dim))
    t = jnp.arange(T, dtype=jnp.float32)
    freqs = jnp.outer(t, inv_freq)
    cos = jnp.cos(freqs).astype(jnp.bfloat16)     # torch caches cos/sin in bf16
    sin = jnp.sin(freqs).astype(jnp.bfloat16)
    cc = jnp.concatenate([cos, cos], axis=-1)     # (T, Dh)
    ss = jnp.concatenate([sin, -sin], axis=-1)    # (T, Dh)
    return cc, ss


def _half_swap(x, half):
    """[x1, x2] -> [x2, x1] along the last dim.  Uses the XLU rotate when the
    head dim is lane-aligned (the realistic Dh=128 case, frees the VALU/store
    slots); falls back to a value-level concat for tiny test-sized heads."""
    if x.shape[-1] % 128 == 0:
        return pltpu.roll(x, shift=half, axis=-1)
    return jnp.concatenate([x[..., half:], x[..., :half]], axis=-1)


def _qkv_norm_rope_kernel(qkv_ref, cc_ref, ss_ref, q_ref, k_ref, v_ref, *,
                          n_head, head_dim, q_scale):
    # qkv_ref: (1, tm, 3C) bf16;  cc/ss: (tm, Dh) bf16 = [cos,cos] / [sin,-sin]
    # q/k/v_ref: (1, H, tm, Dh) bf16 — heads are written straight into the
    # attention layout (full (tm, Dh) lane-dense store per head).
    cc = cc_ref[...].astype(jnp.float32)
    ss = ss_ref[...].astype(jnp.float32)
    half = head_dim // 2
    C = n_head * head_dim

    def norm_rope(xh, scale):
        ms = jnp.mean(xh * xh, axis=-1, keepdims=True)
        xn = xh * (jax.lax.rsqrt(ms + F32_EPS) * scale)   # rms_norm, scale folded in
        return xn * cc + _half_swap(xn, half) * ss        # rotary, one store per head

    for h in range(n_head):                               # static unroll over heads
        lo = h * head_dim
        xq = qkv_ref[0, :, lo:lo + head_dim].astype(jnp.float32)
        xk = qkv_ref[0, :, C + lo:C + lo + head_dim].astype(jnp.float32)
        q_ref[0, h] = norm_rope(xq, q_scale).astype(q_ref.dtype)
        k_ref[0, h] = norm_rope(xk, 1.0).astype(k_ref.dtype)
        v_ref[0, h] = qkv_ref[0, :, 2 * C + lo:2 * C + lo + head_dim].astype(v_ref.dtype)


def qkv_norm_rope(qkv, cc, ss, n_head, head_dim, q_scale):
    """Fused per-head rms_norm + rotary on the packed (B, T, 3C) qkv projection.
    Reads qkv once (no XLA q/k/v slices) and returns q, k, v already in the
    (B, H, T, Dh) attention layout (no XLA transposes)."""
    B, T, C3 = qkv.shape
    assert C3 == 3 * n_head * head_dim
    tm = _tile(T, _ROW_TILE, 8)
    head_spec = pl.BlockSpec((1, n_head, tm, head_dim), lambda b, i: (b, 0, i, 0))
    out_sds = jax.ShapeDtypeStruct((B, n_head, T, head_dim), jnp.bfloat16)
    return pl.pallas_call(
        functools.partial(_qkv_norm_rope_kernel, n_head=n_head,
                          head_dim=head_dim, q_scale=q_scale),
        grid=(B, T // tm),
        out_shape=(out_sds, out_sds, out_sds),
        in_specs=[pl.BlockSpec((1, tm, C3), lambda b, i: (b, i, 0)),
                  pl.BlockSpec((tm, head_dim), lambda b, i: (i, 0)),
                  pl.BlockSpec((tm, head_dim), lambda b, i: (i, 0))],
        out_specs=(head_spec, head_spec, head_spec),
        compiler_params=pltpu.CompilerParams(
            dimension_semantics=("parallel", "parallel")),
    )(qkv, cc, ss)


# ---------------------- flash-style causal attention --------------------------

def _flash_attn_kernel(qi_ref, ki_ref, q_ref, k_ref, v_ref, o_ref,
                       m_ref, l_ref, acc_ref, *, t, n_head, head_dim):
    p = pl.program_id(1)
    qi = qi_ref[p]
    ki = ki_ref[p]

    @pl.when(ki == 0)   # first kv block of this q block (triangular ordering)
    def _():
        m_ref[...] = jnp.full(m_ref.shape, -jnp.inf, jnp.float32)
        l_ref[...] = jnp.zeros(l_ref.shape, jnp.float32)
        acc_ref[...] = jnp.zeros(acc_ref.shape, jnp.float32)

    q = q_ref[0]                                  # (H, t, Dh) bf16, scale pre-folded
    k = k_ref[0]
    v = v_ref[0]
    s = jnp.einsum("hqd,hkd->hqk", q, k, preferred_element_type=jnp.float32)

    # Causal mask built once in 2D and broadcast over heads; only the diagonal
    # block (ki == qi) is masked — strictly-below blocks add an all-zero mask.
    row = jax.lax.broadcasted_iota(jnp.int32, (t, t), 0)
    col = jax.lax.broadcasted_iota(jnp.int32, (t, t), 1)
    neg = jnp.where(jnp.logical_and(ki == qi, col > row), -jnp.inf, 0.0)
    s = s + neg[None, :, :]

    m_prev = m_ref[...]
    m_new = jnp.maximum(m_prev, jnp.max(s, axis=-1, keepdims=True))
    alpha = jnp.exp(m_prev - m_new)
    pmat = jnp.exp(s - m_new)
    l_ref[...] = alpha * l_ref[...] + jnp.sum(pmat, axis=-1, keepdims=True)
    acc_ref[...] = alpha * acc_ref[...] + jnp.einsum(
        "hqk,hkd->hqd", pmat.astype(v.dtype), v, preferred_element_type=jnp.float32)
    m_ref[...] = m_new

    @pl.when(ki == qi)  # diagonal block is the last kv block for this q block
    def _():
        inv_l = pl.reciprocal(l_ref[...], approx=True)
        out = (acc_ref[...] * inv_l).astype(o_ref.dtype)          # (H, t, Dh)
        for h in range(n_head):
            o_ref[0, :, h * head_dim:(h + 1) * head_dim] = out[h]


def causal_flash_attention(q, k, v):
    """q, k, v: (B, H, T, Dh) bf16 (softmax scale pre-folded into q).
    Returns the attention output already re-interleaved as (B, T, H*Dh), ready
    for the output projection without any XLA transpose.  The grid enumerates
    only lower-triangular (q_block, kv_block) pairs via scalar prefetch, so no
    k/v DMA or grid step is spent above the causal diagonal."""
    B, H, T, Dh = q.shape
    t = _tile(T, _TATTN, 8)
    nb = T // t
    qi = np.concatenate([np.full(i + 1, i, np.int32) for i in range(nb)])
    ki = np.concatenate([np.arange(i + 1, dtype=np.int32) for i in range(nb)])
    n_pairs = int(qi.size)

    q_spec = pl.BlockSpec((1, H, t, Dh), lambda b, p, qi_r, ki_r: (b, 0, qi_r[p], 0))
    kv_spec = pl.BlockSpec((1, H, t, Dh), lambda b, p, qi_r, ki_r: (b, 0, ki_r[p], 0))
    o_spec = pl.BlockSpec((1, t, H * Dh), lambda b, p, qi_r, ki_r: (b, qi_r[p], 0))

    return pl.pallas_call(
        functools.partial(_flash_attn_kernel, t=t, n_head=H, head_dim=Dh),
        out_shape=jax.ShapeDtypeStruct((B, T, H * Dh), jnp.bfloat16),
        grid_spec=pltpu.PrefetchScalarGridSpec(
            num_scalar_prefetch=2,
            grid=(B, n_pairs),
            in_specs=[q_spec, kv_spec, kv_spec],
            out_specs=o_spec,
            scratch_shapes=[pltpu.VMEM((H, t, 1), jnp.float32),
                            pltpu.VMEM((H, t, 1), jnp.float32),
                            pltpu.VMEM((H, t, Dh), jnp.float32)]),
        compiler_params=pltpu.CompilerParams(
            dimension_semantics=("parallel", "arbitrary")),
    )(jnp.asarray(qi), jnp.asarray(ki), q, k, v)


# ------------------------------- model glue -----------------------------------

def attention_block(x_norm, p, n_head, cc, ss):
    B, T, C = x_norm.shape
    hd = C // n_head
    # Fused q/k/v projection: one (C, 3C) bf16 matmul, x read from HBM once.
    qkv = linear(x_norm, p["w_qkv"], out_dtype=jnp.bfloat16)          # (B, T, 3C)
    scale = 1.0 / math.sqrt(hd)          # mup disabled -> 1/sqrt(head_dim)
    # rms_norm(q) is scale-invariant, so the attention scale is folded in here.
    q, k, v = qkv_norm_rope(qkv, cc, ss, n_head, hd, q_scale=scale)   # (B, H, T, Dh)
    y = causal_flash_attention(q, k, v)                               # (B, T, C)
    return linear(y, p["w_o"])


def mlp_block(x_norm, p):
    # bf16 activation halves the HBM traffic on the (M, 4C) tensor.
    h = linear(x_norm, p["w_fc"], p["b_fc"], out_dtype=jnp.bfloat16)
    # TODO(synk): fuse bias + sqrt(2)*erf-GELU into the fc matmul's last-k epilogue
    # once lax.erf Mosaic lowering is verified; exact-erf GELU stays in XLA glue.
    h = (math.sqrt(2.0) * jax.nn.gelu(h.astype(jnp.float32),
                                      approximate=False)).astype(jnp.bfloat16)
    return linear(h, p["w_proj"], p["b_proj"])   # dropout p=0.0 -> identity


def gpt_forward(idx, params, n_head):
    B, T = idx.shape
    n_embd = params["wte"].shape[1]
    head_dim = n_embd // n_head
    x = jnp.take(params["wte"], idx, axis=0)     # embedding gather (glue)
    cc, ss = rotary_cache(T, head_dim)           # Rotary module cache, bf16
    for layer in params["blocks"]:
        x = x + attention_block(rms_norm(x, jnp.bfloat16), layer["attn"],
                                n_head, cc, ss)
        x = x + mlp_block(rms_norm(x, jnp.bfloat16), layer["mlp"])
    # targets=None inference path: logits only for the last position.
    x_last = rms_norm(x[:, -1:, :], jnp.bfloat16)
    logits = linear(x_last, params["lm_head"])   # (B, 1, vocab), no bias
    return logits, None


# ---------------------------- parameter init ----------------------------------

def init_params(key, vocab, n_layer, n_head, n_embd, init_std=0.02):
    # Weights stored pre-transposed (in_features, out_features) in bf16 for the MXU.
    del n_head
    proj_std = init_std / math.sqrt(2 * n_layer)
    ks = jax.random.split(key, 2 + n_layer)

    def w(k, shape, std):
        return (std * jax.random.normal(k, shape, jnp.float32)).astype(jnp.bfloat16)

    C = n_embd
    params = {
        "wte": init_std * jax.random.normal(ks[0], (vocab, C), jnp.float32),
        "lm_head": w(ks[1], (C, vocab), init_std),
        "blocks": [],
    }
    for l in range(n_layer):
        lk = jax.random.split(ks[2 + l], 6)
        wq = w(lk[0], (C, C), init_std)
        wk = w(lk[1], (C, C), init_std)
        wv = w(lk[2], (C, C), init_std)
        params["blocks"].append({
            "attn": {
                "w_qkv": jnp.concatenate([wq, wk, wv], axis=1),   # (C, 3C)
                "w_o": w(lk[3], (C, C), proj_std),
            },
            "mlp": {
                "w_fc": w(lk[4], (C, 4 * C), init_std),
                "b_fc": jnp.zeros((4 * C,), jnp.float32),
                "w_proj": w(lk[5], (4 * C, C), proj_std),
                "b_proj": jnp.zeros((C,), jnp.float32),
            },
        })
    return params


if __name__ == "__main__":
    B, T = 2, 8
    vocab, n_layer, n_head, n_embd = 64, 2, 4, 32  # head_dim = 8

    key = jax.random.PRNGKey(0)
    pkey, ikey = jax.random.split(key)
    params = init_params(pkey, vocab, n_layer, n_head, n_embd)
    idx = jax.random.randint(ikey, (B, T), 0, vocab, dtype=jnp.int32)

    fwd = jax.jit(functools.partial(gpt_forward, n_head=n_head))
    logits, loss = fwd(idx, params)
    jax.block_until_ready(logits)
    assert logits.shape == (B, 1, vocab) and loss is None
    print("KERNEL_OK")
</pallas_src>

<mosaic_0001>
module attributes {stable_mosaic.version = 11 : i64} {
  func.func @_rmsnorm_kernel(%arg0: i32, %arg1: memref<16x32xf32, #tpu.memory_space<vmem>>, %arg2: memref<16x32xbf16, #tpu.memory_space<vmem>>) attributes {dimension_semantics = [#tpu.dimension_semantics<parallel>], iteration_bounds = array<i64: 1>, scalar_prefetch = 0 : i64, scratch_operands = 0 : i64, tpu.core_type = #tpu.core_type<tc>, window_params = [{transform_indices = @transform_0, window_bounds = array<i64: 16, 32>}, {transform_indices = @transform_1, window_bounds = array<i64: 16, 32>}]} {
    %c0 = arith.constant 0 : index
    %c0_0 = arith.constant 0 : index
    %0 = vector.load %arg1[%c0, %c0_0] : memref<16x32xf32, #tpu.memory_space<vmem>>, vector<16x32xf32>
    %1 = arith.mulf %0, %0 : vector<16x32xf32>
    %cst = arith.constant dense<0.000000e+00> : vector<16xf32>
    %2 = vector.multi_reduction <add>, %1, %cst [1] : vector<16x32xf32> to vector<16xf32>
    %3 = vector.shape_cast %2 : vector<16xf32> to vector<16x1xf32>
    %cst_1 = arith.constant 3.200000e+01 : f32
    %4 = vector.broadcast %cst_1 : f32 to vector<16x1xf32>
    %5 = arith.divf %3, %4 : vector<16x1xf32>
    %cst_2 = arith.constant 1.1920929E-7 : f32
    %6 = vector.broadcast %cst_2 : f32 to vector<16x1xf32>
    %7 = arith.addf %5, %6 : vector<16x1xf32>
    %8 = math.rsqrt %7 : vector<16x1xf32>
    %9 = vector.broadcast %8 : vector<16x1xf32> to vector<16x32xf32>
    %10 = arith.mulf %0, %9 : vector<16x32xf32>
    %11 = arith.truncf %10 : vector<16x32xf32> to vector<16x32xbf16>
    %c0_3 = arith.constant 0 : index
    %c0_4 = arith.constant 0 : index
    %12 = vector.load %arg2[%c0_3, %c0_4] : memref<16x32xbf16, #tpu.memory_space<vmem>>, vector<16x32xbf16>
    tpu.vector_store %arg2[%c0_3, %c0_4], %11 {strides = array<i32>} : memref<16x32xbf16, #tpu.memory_space<vmem>>, vector<16x32xbf16>,
    return
  }
  func.func @transform_0(%arg0: i32) -> (i32, i32) {
    %c0_i32 = arith.constant 0 : i32
    %c0_i32_0 = arith.constant 0 : i32
    return %arg0, %c0_i32 : i32, i32
  }
  func.func @transform_1(%arg0: i32) -> (i32, i32) {
    %c0_i32 = arith.constant 0 : i32
    %c0_i32_0 = arith.constant 0 : i32
    return %arg0, %c0_i32 : i32, i32
  }
}

module attributes {stable_mosaic.version = 11 : i64} {
  func.func @_matmul_kernel(%arg0: i32, %arg1: i32, %arg2: i32, %arg3: memref<16x32xbf16, #tpu.memory_space<vmem>>, %arg4: memref<32x96xbf16, #tpu.memory_space<vmem>>, %arg5: memref<16x96xbf16, #tpu.memory_space<vmem>>, %arg6: memref<16x96xf32, #tpu.memory_space<vmem>>) attributes {dimension_semantics = [#tpu.dimension_semantics<parallel>, #tpu.dimension_semantics<parallel>, #tpu.dimension_semantics<arbitrary>], iteration_bounds = array<i64: 1, 1, 1>, scalar_prefetch = 0 : i64, scratch_operands = 1 : i64, tpu.core_type = #tpu.core_type<tc>, window_params = [{transform_indices = @transform_0, window_bounds = array<i64: 16, 32>}, {transform_indices = @transform_1, window_bounds = array<i64: 32, 96>}, {transform_indices = @transform_2, window_bounds = array<i64: 16, 96>}]} {
    %c0_i32 = arith.constant 0 : i32
    %0 = arith.cmpi eq, %arg2, %c0_i32 : i32
    %1 = arith.extui %0 : i1 to i32
    %c0_i32_0 = arith.constant 0 : i32
    %2 = arith.cmpi ne, %1, %c0_i32_0 : i32
    scf.if %2 {
      %cst_10 = arith.constant 0.000000e+00 : f32
      %12 = vector.broadcast %cst_10 : f32 to vector<16x96xf32>
      %c0_11 = arith.constant 0 : index
      %c0_12 = arith.constant 0 : index
      %13 = vector.load %arg6[%c0_11, %c0_12] : memref<16x96xf32, #tpu.memory_space<vmem>>, vector<16x96xf32>
      tpu.vector_store %arg6[%c0_11, %c0_12], %12 {strides = array<i32>} : memref<16x96xf32, #tpu.memory_space<vmem>>, vector<16x96xf32>,
    } else {
    }
    %c0 = arith.constant 0 : index
    %c0_1 = arith.constant 0 : index
    %3 = vector.load %arg6[%c0, %c0_1] : memref<16x96xf32, #tpu.memory_space<vmem>>, vector<16x96xf32>
    %c0_2 = arith.constant 0 : index
    %c0_3 = arith.constant 0 : index
    %4 = vector.load %arg3[%c0_2, %c0_3] : memref<16x32xbf16, #tpu.memory_space<vmem>>, vector<16x32xbf16>
    %c0_4 = arith.constant 0 : index
    %c0_5 = arith.constant 0 : index
    %5 = vector.load %arg4[%c0_4, %c0_5] : memref<32x96xbf16, #tpu.memory_space<vmem>>, vector<32x96xbf16>
    %cst = arith.constant dense<0.000000e+00> : vector<16x96xf32>
    %6 = tpu.matmul %4, %5, %cst {dimension_numbers = #tpu.dot_dimension_numbers<[1], [0], [0], [1], [0, 0, 1, 1], [], []>} : vector<16x32xbf16>, vector<32x96xbf16>, vector<16x96xf32> -> vector<16x96xf32>
    %7 = arith.addf %3, %6 : vector<16x96xf32>
    %c0_6 = arith.constant 0 : index
    %c0_7 = arith.constant 0 : index
    %8 = vector.load %arg6[%c0_6, %c0_7] : memref<16x96xf32, #tpu.memory_space<vmem>>, vector<16x96xf32>
    tpu.vector_store %arg6[%c0_6, %c0_7], %7 {strides = array<i32>} : memref<16x96xf32, #tpu.memory_space<vmem>>, vector<16x96xf32>,
    %c0_i32_8 = arith.constant 0 : i32
    %9 = arith.cmpi eq, %arg2, %c0_i32_8 : i32
    %10 = arith.extui %9 : i1 to i32
    %c0_i32_9 = arith.constant 0 : i32
    %11 = arith.cmpi ne, %10, %c0_i32_9 : i32
    scf.if %11 {
      %c0_10 = arith.constant 0 : index
      %c0_11 = arith.constant 0 : index
      %12 = vector.load %arg6[%c0_10, %c0_11] : memref<16x96xf32, #tpu.memory_space<vmem>>, vector<16x96xf32>
      %13 = arith.truncf %12 : vector<16x96xf32> to vector<16x96xbf16>
      %c0_12 = arith.constant 0 : index
      %c0_13 = arith.constant 0 : index
      %14 = vector.load %arg5[%c0_12, %c0_13] : memref<16x96xbf16, #tpu.memory_space<vmem>>, vector<16x96xbf16>
      tpu.vector_store %arg5[%c0_12, %c0_13], %13 {strides = array<i32>} : memref<16x96xbf16, #tpu.memory_space<vmem>>, vector<16x96xbf16>,
    } else {
    }
    return
  }
  func.func @transform_0(%arg0: i32, %arg1: i32, %arg2: i32) -> (i32, i32) {
    %c0_i32 = arith.constant 0 : i32
    return %arg0, %arg2 : i32, i32
  }
  func.func @transform_1(%arg0: i32, %arg1: i32, %arg2: i32) -> (i32, i32) {
    %c0_i32 = arith.constant 0 : i32
    return %arg2, %arg1 : i32, i32
  }
  func.func @transform_2(%arg0: i32, %arg1: i32, %arg2: i32) -> (i32, i32) {
    %c0_i32 = arith.constant 0 : i32
    return %arg0, %arg1 : i32, i32
  }
}

module attributes {stable_mosaic.version = 11 : i64} {
  func.func @_flash_attn_kernel(%arg0: i32, %arg1: i32, %arg2: memref<1xi32, #tpu.memory_space<smem>>, %arg3: memref<1xi32, #tpu.memory_space<smem>>, %arg4: memref<1x4x8x8xbf16, #tpu.memory_space<vmem>>, %arg5: memref<1x4x8x8xbf16, #tpu.memory_space<vmem>>, %arg6: memref<1x4x8x8xbf16, #tpu.memory_space<vmem>>, %arg7: memref<1x8x32xbf16, #tpu.memory_space<vmem>>, %arg8: memref<4x8x1xf32, #tpu.memory_space<vmem>>, %arg9: memref<4x8x1xf32, #tpu.memory_space<vmem>>, %arg10: memref<4x8x8xf32, #tpu.memory_space<vmem>>) attributes {dimension_semantics = [#tpu.dimension_semantics<parallel>, #tpu.dimension_semantics<arbitrary>], iteration_bounds = array<i64: 2, 1>, scalar_prefetch = 2 : i64, scratch_operands = 3 : i64, tpu.core_type = #tpu.core_type<tc>, window_params = [{transform_indices = @transform_0, window_bounds = array<i64: 1, 4, 8, 8>}, {transform_indices = @transform_1, window_bounds = array<i64: 1, 4, 8, 8>}, {transform_indices = @transform_2, window_bounds = array<i64: 1, 4, 8, 8>}, {transform_indices = @transform_3, window_bounds = array<i64: 1, 8, 32>}]} {
    %0 = arith.index_cast %arg1 : i32 to index
    %1 = memref.load %arg2[%0] : memref<1xi32, #tpu.memory_space<smem>>
    %2 = arith.index_cast %arg1 : i32 to index
    %3 = memref.load %arg3[%2] : memref<1xi32, #tpu.memory_space<smem>>
    %c0_i32 = arith.constant 0 : i32
    %4 = arith.cmpi eq, %3, %c0_i32 : i32
    %5 = arith.extui %4 : i1 to i32
    %c0_i32_0 = arith.constant 0 : i32
    %6 = arith.cmpi ne, %5, %c0_i32_0 : i32
    scf.if %6 {
      %cst_36 = arith.constant 0xFF800000 : f32
      %52 = vector.broadcast %cst_36 : f32 to vector<4x8x1xf32>
      %c0_37 = arith.constant 0 : index
      %c0_38 = arith.constant 0 : index
      %c0_39 = arith.constant 0 : index
      %53 = vector.load %arg8[%c0_37, %c0_38, %c0_39] : memref<4x8x1xf32, #tpu.memory_space<vmem>>, vector<4x8x1xf32>
      tpu.vector_store %arg8[%c0_37, %c0_38, %c0_39], %52 {strides = array<i32>} : memref<4x8x1xf32, #tpu.memory_space<vmem>>, vector<4x8x1xf32>,
      %cst_40 = arith.constant 0.000000e+00 : f32
      %54 = vector.broadcast %cst_40 : f32 to vector<4x8x1xf32>
      %c0_41 = arith.constant 0 : index
      %c0_42 = arith.constant 0 : index
      %c0_43 = arith.constant 0 : index
      %55 = vector.load %arg9[%c0_41, %c0_42, %c0_43] : memref<4x8x1xf32, #tpu.memory_space<vmem>>, vector<4x8x1xf32>
      tpu.vector_store %arg9[%c0_41, %c0_42, %c0_43], %54 {strides = array<i32>} : memref<4x8x1xf32, #tpu.memory_space<vmem>>, vector<4x8x1xf32>,
      %cst_44 = arith.constant 0.000000e+00 : f32
      %56 = vector.broadcast %cst_44 : f32 to vector<4x8x8xf32>
      %c0_45 = arith.constant 0 : index
      %c0_46 = arith.constant 0 : index
      %c0_47 = arith.constant 0 : index
      %57 = vector.load %arg10[%c0_45, %c0_46, %c0_47] : memref<4x8x8xf32, #tpu.memory_space<vmem>>, vector<4x8x8xf32>
      tpu.vector_store %arg10[%c0_45, %c0_46, %c0_47], %56 {strides = array<i32>} : memref<4x8x8xf32, #tpu.memory_space<vmem>>, vector<4x8x8xf32>,
    } else {
    }
    %c0 = arith.constant 0 : index
    %c0_1 = arith.constant 0 : index
    %c0_2 = arith.constant 0 : index
    %c0_3 = arith.constant 0 : index
    %7 = vector.load %arg4[%c0, %c0_1, %c0_2, %c0_3] : memref<1x4x8x8xbf16, #tpu.memory_space<vmem>>, vector<1x4x8x8xbf16>
    %8 = vector.shape_cast %7 : vector<1x4x8x8xbf16> to vector<4x8x8xbf16>
    %c0_4 = arith.constant 0 : index
    %c0_5 = arith.constant 0 : index
    %c0_6 = arith.constant 0 : index
    %c0_7 = arith.constant 0 : index
    %9 = vector.load %arg5[%c0_4, %c0_5, %c0_6, %c0_7] : memref<1x4x8x8xbf16, #tpu.memory_space<vmem>>, vector<1x4x8x8xbf16>
    %10 = vector.shape_cast %9 : vector<1x4x8x8xbf16> to vector<4x8x8xbf16>
    %c0_8 = arith.constant 0 : index
    %c0_9 = arith.constant 0 : index
    %c0_10 = arith.constant 0 : index
    %c0_11 = arith.constant 0 : index
    %11 = vector.load %arg6[%c0_8, %c0_9, %c0_10, %c0_11] : memref<1x4x8x8xbf16, #tpu.memory_space<vmem>>, vector<1x4x8x8xbf16>
    %12 = vector.shape_cast %11 : vector<1x4x8x8xbf16> to vector<4x8x8xbf16>
    "tpu.trace_start"() <{level = 10 : i32, message = "hqd,hkd->hqk"}> : () -> ()
    %cst = arith.constant dense<0.000000e+00> : vector<4x8x8xf32>
    %13 = tpu.matmul %8, %10, %cst {dimension_numbers = #tpu.dot_dimension_numbers<[2], [2], [1], [1], [0, 0, 0, 1, 1, 1], [0], [0]>} : vector<4x8x8xbf16>, vector<4x8x8xbf16>, vector<4x8x8xf32> -> vector<4x8x8xf32>
    "tpu.trace_stop"() : () -> ()
    %14 = tpu.iota {dimensions = array<i32: 0>} : vector<8x8xi32>
    %15 = tpu.iota {dimensions = array<i32: 1>} : vector<8x8xi32>
    %16 = arith.cmpi eq, %3, %1 : i32
    %17 = arith.cmpi sgt, %15, %14 : vector<8x8xi32>
    %18 = vector.broadcast %16 : i1 to vector<8x8xi1>
    %19 = arith.andi %18, %17 : vector<8x8xi1>
    %cst_12 = arith.constant 0xFF800000 : f32
    %cst_13 = arith.constant 0.000000e+00 : f32
    %20 = vector.broadcast %cst_12 : f32 to vector<8x8xf32>
    %21 = vector.broadcast %cst_13 : f32 to vector<8x8xf32>
    %22 = arith.select %19, %20, %21 : vector<8x8xi1>, vector<8x8xf32>
    %23 = vector.shape_cast %22 : vector<8x8xf32> to vector<1x8x8xf32>
    %24 = vector.broadcast %23 : vector<1x8x8xf32> to vector<4x8x8xf32>
    %25 = arith.addf %13, %24 : vector<4x8x8xf32>
    %c0_14 = arith.constant 0 : index
    %c0_15 = arith.constant 0 : index
    %c0_16 = arith.constant 0 : index
    %26 = vector.load %arg8[%c0_14, %c0_15, %c0_16] : memref<4x8x1xf32, #tpu.memory_space<vmem>>, vector<4x8x1xf32>
    %cst_17 = arith.constant dense<0xFF800000> : vector<4x8xf32>
    %27 = vector.multi_reduction <maximumf>, %25, %cst_17 [2] : vector<4x8x8xf32> to vector<4x8xf32>
    %28 = vector.shape_cast %27 : vector<4x8xf32> to vector<4x8x1xf32>
    %29 = arith.maximumf %26, %28 : vector<4x8x1xf32>
    %30 = arith.subf %26, %29 : vector<4x8x1xf32>
    %31 = math.exp %30 : vector<4x8x1xf32>
    %32 = vector.broadcast %29 : vector<4x8x1xf32> to vector<4x8x8xf32>
    %33 = arith.subf %25, %32 : vector<4x8x8xf32>
    %34 = math.exp %33 : vector<4x8x8xf32>
    %c0_18 = arith.constant 0 : index
    %c0_19 = arith.constant 0 : index
    %c0_20 = arith.constant 0 : index
    %35 = vector.load %arg9[%c0_18, %c0_19, %c0_20] : memref<4x8x1xf32, #tpu.memory_space<vmem>>, vector<4x8x1xf32>
    %36 = arith.mulf %31, %35 : vector<4x8x1xf32>
    %cst_21 = arith.constant dense<0.000000e+00> : vector<4x8xf32>
    %37 = vector.multi_reduction <add>, %34, %cst_21 [2] : vector<4x8x8xf32> to vector<4x8xf32>
    %38 = vector.shape_cast %37 : vector<4x8xf32> to vector<4x8x1xf32>
    %39 = arith.addf %36, %38 : vector<4x8x1xf32>
    %c0_22 = arith.constant 0 : index
    %c0_23 = arith.constant 0 : index
    %c0_24 = arith.constant 0 : index
    %40 = vector.load %arg9[%c0_22, %c0_23, %c0_24] : memref<4x8x1xf32, #tpu.memory_space<vmem>>, vector<4x8x1xf32>
    tpu.vector_store %arg9[%c0_22, %c0_23, %c0_24], %39 {strides = array<i32>} : memref<4x8x1xf32, #tpu.memory_space<vmem>>, vector<4x8x1xf32>,
    %c0_25 = arith.constant 0 : index
    %c0_26 = arith.constant 0 : index
    %c0_27 = arith.constant 0 : index
    %41 = vector.load %arg10[%c0_25, %c0_26, %c0_27] : memref<4x8x8xf32, #tpu.memory_space<vmem>>, vector<4x8x8xf32>
    %42 = vector.broadcast %31 : vector<4x8x1xf32> to vector<4x8x8xf32>
    %43 = arith.mulf %42, %41 : vector<4x8x8xf32>
    %44 = arith.truncf %34 : vector<4x8x8xf32> to vector<4x8x8xbf16>
    "tpu.trace_start"() <{level = 10 : i32, message = "hqk,hkd->hqd"}> : () -> ()
    %cst_28 = arith.constant dense<0.000000e+00> : vector<4x8x8xf32>
    %45 = tpu.matmul %44, %12, %cst_28 {dimension_numbers = #tpu.dot_dimension_numbers<[2], [1], [1], [2], [0, 0, 0, 1, 1, 2], [0], [0]>} : vector<4x8x8xbf16>, vector<4x8x8xbf16>, vector<4x8x8xf32> -> vector<4x8x8xf32>
    "tpu.trace_stop"() : () -> ()
    %46 = arith.addf %43, %45 : vector<4x8x8xf32>
    %c0_29 = arith.constant 0 : index
    %c0_30 = arith.constant 0 : index
    %c0_31 = arith.constant 0 : index
    %47 = vector.load %arg10[%c0_29, %c0_30, %c0_31] : memref<4x8x8xf32, #tpu.memory_space<vmem>>, vector<4x8x8xf32>
    tpu.vector_store %arg10[%c0_29, %c0_30, %c0_31], %46 {strides = array<i32>} : memref<4x8x8xf32, #tpu.memory_space<vmem>>, vector<4x8x8xf32>,
    %c0_32 = arith.constant 0 : index
    %c0_33 = arith.constant 0 : index
    %c0_34 = arith.constant 0 : index
    %48 = vector.load %arg8[%c0_32, %c0_33, %c0_34] : memref<4x8x1xf32, #tpu.memory_space<vmem>>, vector<4x8x1xf32>
    tpu.vector_store %arg8[%c0_32, %c0_33, %c0_34], %29 {strides = array<i32>} : memref<4x8x1xf32, #tpu.memory_space<vmem>>, vector<4x8x1xf32>,
    %49 = arith.cmpi eq, %3, %1 : i32
    %50 = arith.extui %49 : i1 to i32
    %c0_i32_35 = arith.constant 0 : i32
    %51 = arith.cmpi ne, %50, %c0_i32_35 : i32
    scf.if %51 {
      %c0_36 = arith.constant 0 : index
      %c0_37 = arith.constant 0 : index
      %c0_38 = arith.constant 0 : index
      %52 = vector.load %arg9[%c0_36, %c0_37, %c0_38] : memref<4x8x1xf32, #tpu.memory_space<vmem>>, vector<4x8x1xf32>
      %53 = tpu.reciprocal %52 {approx = true} : vector<4x8x1xf32> -> vector<4x8x1xf32>
      %c0_39 = arith.constant 0 : index
      %c0_40 = arith.constant 0 : index
      %c0_41 = arith.constant 0 : index
      %54 = vector.load %arg10[%c0_39, %c0_40, %c0_41] : memref<4x8x8xf32, #tpu.memory_space<vmem>>, vector<4x8x8xf32>
      %55 = vector.broadcast %53 : vector<4x8x1xf32> to vector<4x8x8xf32>
      %56 = arith.mulf %54, %55 : vector<4x8x8xf32>
      %57 = arith.truncf %56 : vector<4x8x8xf32> to vector<4x8x8xbf16>
      %58 = vector.extract_strided_slice %57 {offsets = [0, 0, 0], sizes = [1, 8, 8], strides = [1, 1, 1]} : vector<4x8x8xbf16> to vector<1x8x8xbf16>
      %59 = vector.shape_cast %58 : vector<1x8x8xbf16> to vector<8x8xbf16>
      %c0_42 = arith.constant 0 : index
      %c0_43 = arith.constant 0 : index
      %c0_44 = arith.constant 0 : index
      %60 = vector.load %arg7[%c0_42, %c0_43, %c0_44] : memref<1x8x32xbf16, #tpu.memory_space<vmem>>, vector<1x8x8xbf16>
      %61 = vector.shape_cast %60 : vector<1x8x8xbf16> to vector<8x8xbf16>
      %62 = vector.shape_cast %59 : vector<8x8xbf16> to vector<1x8x8xbf16>
      tpu.vector_store %arg7[%c0_42, %c0_43, %c0_44], %62 {strides = array<i32>} : memref<1x8x32xbf16, #tpu.memory_space<vmem>>, vector<1x8x8xbf16>,
      %63 = vector.extract_strided_slice %57 {offsets = [1, 0, 0], sizes = [1, 8, 8], strides = [1, 1, 1]} : vector<4x8x8xbf16> to vector<1x8x8xbf16>
      %64 = vector.shape_cast %63 : vector<1x8x8xbf16> to vector<8x8xbf16>
      %c0_45 = arith.constant 0 : index
      %c0_46 = arith.constant 0 : index
      %c8 = arith.constant 8 : index
      %65 = vector.load %arg7[%c0_45, %c0_46, %c8] : memref<1x8x32xbf16, #tpu.memory_space<vmem>>, vector<1x8x8xbf16>
      %66 = vector.shape_cast %65 : vector<1x8x8xbf16> to vector<8x8xbf16>
      %67 = vector.shape_cast %64 : vector<8x8xbf16> to vector<1x8x8xbf16>
      tpu.vector_store %arg7[%c0_45, %c0_46, %c8], %67 {strides = array<i32>} : memref<1x8x32xbf16, #tpu.memory_space<vmem>>, vector<1x8x8xbf16>,
      %68 = vector.extract_strided_slice %57 {offsets = [2, 0, 0], sizes = [1, 8, 8], strides = [1, 1, 1]} : vector<4x8x8xbf16> to vector<1x8x8xbf16>
      %69 = vector.shape_cast %68 : vector<1x8x8xbf16> to vector<8x8xbf16>
      %c0_47 = arith.constant 0 : index
      %c0_48 = arith.constant 0 : index
      %c16 = arith.constant 16 : index
      %70 = vector.load %arg7[%c0_47, %c0_48, %c16] : memref<1x8x32xbf16, #tpu.memory_space<vmem>>, vector<1x8x8xbf16>
      %71 = vector.shape_cast %70 : vector<1x8x8xbf16> to vector<8x8xbf16>
      %72 = vector.shape_cast %69 : vector<8x8xbf16> to vector<1x8x8xbf16>
      tpu.vector_store %arg7[%c0_47, %c0_48, %c16], %72 {strides = array<i32>} : memref<1x8x32xbf16, #tpu.memory_space<vmem>>, vector<1x8x8xbf16>,
      %73 = vector.extract_strided_slice %57 {offsets = [3, 0, 0], sizes = [1, 8, 8], strides = [1, 1, 1]} : vector<4x8x8xbf16> to vector<1x8x8xbf16>
      %74 = vector.shape_cast %73 : vector<1x8x8xbf16> to vector<8x8xbf16>
      %c0_49 = arith.constant 0 : index
      %c0_50 = arith.constant 0 : index
      %c24 = arith.constant 24 : index
      %75 = vector.load %arg7[%c0_49, %c0_50, %c24] : memref<1x8x32xbf16, #tpu.memory_space<vmem>>, vector<1x8x8xbf16>
      %76 = vector.shape_cast %75 : vector<1x8x8xbf16> to vector<8x8xbf16>
      %77 = vector.shape_cast %74 : vector<8x8xbf16> to vector<1x8x8xbf16>
      tpu.vector_store %arg7[%c0_49, %c0_50, %c24], %77 {strides = array<i32>} : memref<1x8x32xbf16, #tpu.memory_space<vmem>>, vector<1x8x8xbf16>,
    } else {
    }
    return
  }
  func.func @transform_0(%arg0: i32, %arg1: i32, %arg2: memref<1xi32, #tpu.memory_space<smem>>, %arg3: memref<1xi32, #tpu.memory_space<smem>>) -> (i32, i32, i32, i32) {
    %0 = arith.index_cast %arg1 : i32 to index
    %1 = memref.load %arg2[%0] : memref<1xi32, #tpu.memory_space<smem>>
    %c0_i32 = arith.constant 0 : i32
    %c0_i32_0 = arith.constant 0 : i32
    %c0_i32_1 = arith.constant 0 : i32
    return %arg0, %c0_i32, %1, %c0_i32_0 : i32, i32, i32, i32
  }
  func.func @transform_1(%arg0: i32, %arg1: i32, %arg2: memref<1xi32, #tpu.memory_space<smem>>, %arg3: memref<1xi32, #tpu.memory_space<smem>>) -> (i32, i32, i32, i32) {
    %0 = arith.index_cast %arg1 : i32 to index
    %1 = memref.load %arg3[%0] : memref<1xi32, #tpu.memory_space<smem>>
    %c0_i32 = arith.constant 0 : i32
    %c0_i32_0 = arith.constant 0 : i32
    %c0_i32_1 = arith.constant 0 : i32
    return %arg0, %c0_i32, %1, %c0_i32_0 : i32, i32, i32, i32
  }
  func.func @transform_2(%arg0: i32, %arg1: i32, %arg2: memref<1xi32, #tpu.memory_space<smem>>, %arg3: memref<1xi32, #tpu.memory_space<smem>>) -> (i32, i32, i32, i32) {
    %0 = arith.index_cast %arg1 : i32 to index
    %1 = memref.load %arg3[%0] : memref<1xi32, #tpu.memory_space<smem>>
    %c0_i32 = arith.constant 0 : i32
    %c0_i32_0 = arith.constant 0 : i32
    %c0_i32_1 = arith.constant 0 : i32
    return %arg0, %c0_i32, %1, %c0_i32_0 : i32, i32, i32, i32
  }
  func.func @transform_3(%arg0: i32, %arg1: i32, %arg2: memref<1xi32, #tpu.memory_space<smem>>, %arg3: memref<1xi32, #tpu.memory_space<smem>>) -> (i32, i32, i32) {
    %0 = arith.index_cast %arg1 : i32 to index
    %1 = memref.load %arg2[%0] : memref<1xi32, #tpu.memory_space<smem>>
    %c0_i32 = arith.constant 0 : i32
    %c0_i32_0 = arith.constant 0 : i32
    return %arg0, %1, %c0_i32 : i32, i32, i32
  }
}

module attributes {stable_mosaic.version = 11 : i64} {
  func.func @_qkv_norm_rope_kernel(%arg0: i32, %arg1: i32, %arg2: memref<1x8x96xbf16, #tpu.memory_space<vmem>>, %arg3: memref<8x8xbf16, #tpu.memory_space<vmem>>, %arg4: memref<8x8xbf16, #tpu.memory_space<vmem>>, %arg5: memref<1x4x8x8xbf16, #tpu.memory_space<vmem>>, %arg6: memref<1x4x8x8xbf16, #tpu.memory_space<vmem>>, %arg7: memref<1x4x8x8xbf16, #tpu.memory_space<vmem>>) attributes {dimension_semantics = [#tpu.dimension_semantics<parallel>, #tpu.dimension_semantics<parallel>], iteration_bounds = array<i64: 2, 1>, scalar_prefetch = 0 : i64, scratch_operands = 0 : i64, tpu.core_type = #tpu.core_type<tc>, window_params = [{transform_indices = @transform_0, window_bounds = array<i64: 1, 8, 96>}, {transform_indices = @transform_1, window_bounds = array<i64: 8, 8>}, {transform_indices = @transform_2, window_bounds = array<i64: 8, 8>}, {transform_indices = @transform_3, window_bounds = array<i64: 1, 4, 8, 8>}, {transform_indices = @transform_4, window_bounds = array<i64: 1, 4, 8, 8>}, {transform_indices = @transform_5, window_bounds = array<i64: 1, 4, 8, 8>}]} {
    %c0 = arith.constant 0 : index
    %c0_0 = arith.constant 0 : index
    %0 = vector.load %arg3[%c0, %c0_0] : memref<8x8xbf16, #tpu.memory_space<vmem>>, vector<8x8xbf16>
    %1 = arith.extf %0 : vector<8x8xbf16> to vector<8x8xf32>
    %c0_1 = arith.constant 0 : index
    %c0_2 = arith.constant 0 : index
    %2 = vector.load %arg4[%c0_1, %c0_2] : memref<8x8xbf16, #tpu.memory_space<vmem>>, vector<8x8xbf16>
    %3 = arith.extf %2 : vector<8x8xbf16> to vector<8x8xf32>
    %c0_3 = arith.constant 0 : index
    %c0_4 = arith.constant 0 : index
    %c0_5 = arith.constant 0 : index
    %4 = vector.load %arg2[%c0_3, %c0_4, %c0_5] : memref<1x8x96xbf16, #tpu.memory_space<vmem>>, vector<1x8x8xbf16>
    %5 = vector.shape_cast %4 : vector<1x8x8xbf16> to vector<8x8xbf16>
    %6 = arith.extf %5 : vector<8x8xbf16> to vector<8x8xf32>
    %c0_6 = arith.constant 0 : index
    %c0_7 = arith.constant 0 : index
    %c32 = arith.constant 32 : index
    %7 = vector.load %arg2[%c0_6, %c0_7, %c32] : memref<1x8x96xbf16, #tpu.memory_space<vmem>>, vector<1x8x8xbf16>
    %8 = vector.shape_cast %7 : vector<1x8x8xbf16> to vector<8x8xbf16>
    %9 = arith.extf %8 : vector<8x8xbf16> to vector<8x8xf32>
    %10 = arith.mulf %6, %6 : vector<8x8xf32>
    %cst = arith.constant dense<0.000000e+00> : vector<8xf32>
    %11 = vector.multi_reduction <add>, %10, %cst [1] : vector<8x8xf32> to vector<8xf32>
    %12 = vector.shape_cast %11 : vector<8xf32> to vector<8x1xf32>
    %cst_8 = arith.constant 8.000000e+00 : f32
    %13 = vector.broadcast %cst_8 : f32 to vector<8x1xf32>
    %14 = arith.divf %12, %13 : vector<8x1xf32>
    %cst_9 = arith.constant 1.1920929E-7 : f32
    %15 = vector.broadcast %cst_9 : f32 to vector<8x1xf32>
    %16 = arith.addf %14, %15 : vector<8x1xf32>
    %17 = math.rsqrt %16 : vector<8x1xf32>
    %cst_10 = arith.constant 0.353553385 : f32
    %18 = vector.broadcast %cst_10 : f32 to vector<8x1xf32>
    %19 = arith.mulf %17, %18 : vector<8x1xf32>
    %20 = vector.broadcast %19 : vector<8x1xf32> to vector<8x8xf32>
    %21 = arith.mulf %6, %20 : vector<8x8xf32>
    %22 = arith.mulf %21, %1 : vector<8x8xf32>
    %23 = vector.extract_strided_slice %21 {offsets = [0, 4], sizes = [8, 4], strides = [1, 1]} : vector<8x8xf32> to vector<8x4xf32>
    %24 = vector.extract_strided_slice %21 {offsets = [0, 0], sizes = [8, 4], strides = [1, 1]} : vector<8x8xf32> to vector<8x4xf32>
    %25 = tpu.concatenate %23, %24 in 1 : vector<8x4xf32>, vector<8x4xf32> -> vector<8x8xf32>
    %26 = arith.mulf %25, %3 : vector<8x8xf32>
    %27 = arith.addf %22, %26 : vector<8x8xf32>
    %28 = arith.truncf %27 : vector<8x8xf32> to vector<8x8xbf16>
    %c0_11 = arith.constant 0 : index
    %c0_12 = arith.constant 0 : index
    %c0_13 = arith.constant 0 : index
    %c0_14 = arith.constant 0 : index
    %29 = vector.load %arg5[%c0_11, %c0_12, %c0_13, %c0_14] : memref<1x4x8x8xbf16, #tpu.memory_space<vmem>>, vector<1x1x8x8xbf16>
    %30 = vector.shape_cast %29 : vector<1x1x8x8xbf16> to vector<8x8xbf16>
    %31 = vector.shape_cast %28 : vector<8x8xbf16> to vector<1x1x8x8xbf16>
    tpu.vector_store %arg5[%c0_11, %c0_12, %c0_13, %c0_14], %31 {strides = array<i32>} : memref<1x4x8x8xbf16, #tpu.memory_space<vmem>>, vector<1x1x8x8xbf16>,
    %32 = arith.mulf %9, %9 : vector<8x8xf32>
    %cst_15 = arith.constant dense<0.000000e+00> : vector<8xf32>
    %33 = vector.multi_reduction <add>, %32, %cst_15 [1] : vector<8x8xf32> to vector<8xf32>
    %34 = vector.shape_cast %33 : vector<8xf32> to vector<8x1xf32>
    %cst_16 = arith.constant 8.000000e+00 : f32
    %35 = vector.broadcast %cst_16 : f32 to vector<8x1xf32>
    %36 = arith.divf %34, %35 : vector<8x1xf32>
    %cst_17 = arith.constant 1.1920929E-7 : f32
    %37 = vector.broadcast %cst_17 : f32 to vector<8x1xf32>
    %38 = arith.addf %36, %37 : vector<8x1xf32>
    %39 = math.rsqrt %38 : vector<8x1xf32>
    %cst_18 = arith.constant 1.000000e+00 : f32
    %40 = vector.broadcast %cst_18 : f32 to vector<8x1xf32>
    %41 = arith.mulf %39, %40 : vector<8x1xf32>
    %42 = vector.broadcast %41 : vector<8x1xf32> to vector<8x8xf32>
    %43 = arith.mulf %9, %42 : vector<8x8xf32>
    %44 = arith.mulf %43, %1 : vector<8x8xf32>
    %45 = vector.extract_strided_slice %43 {offsets = [0, 4], sizes = [8, 4], strides = [1, 1]} : vector<8x8xf32> to vector<8x4xf32>
    %46 = vector.extract_strided_slice %43 {offsets = [0, 0], sizes = [8, 4], strides = [1, 1]} : vector<8x8xf32> to vector<8x4xf32>
    %47 = tpu.concatenate %45, %46 in 1 : vector<8x4xf32>, vector<8x4xf32> -> vector<8x8xf32>
    %48 = arith.mulf %47, %3 : vector<8x8xf32>
    %49 = arith.addf %44, %48 : vector<8x8xf32>
    %50 = arith.truncf %49 : vector<8x8xf32> to vector<8x8xbf16>
    %c0_19 = arith.constant 0 : index
    %c0_20 = arith.constant 0 : index
    %c0_21 = arith.constant 0 : index
    %c0_22 = arith.constant 0 : index
    %51 = vector.load %arg6[%c0_19, %c0_20, %c0_21, %c0_22] : memref<1x4x8x8xbf16, #tpu.memory_space<vmem>>, vector<1x1x8x8xbf16>
    %52 = vector.shape_cast %51 : vector<1x1x8x8xbf16> to vector<8x8xbf16>
    %53 = vector.shape_cast %50 : vector<8x8xbf16> to vector<1x1x8x8xbf16>
    tpu.vector_store %arg6[%c0_19, %c0_20, %c0_21, %c0_22], %53 {strides = array<i32>} : memref<1x4x8x8xbf16, #tpu.memory_space<vmem>>, vector<1x1x8x8xbf16>,
    %c0_23 = arith.constant 0 : index
    %c0_24 = arith.constant 0 : index
    %c64 = arith.constant 64 : index
    %54 = vector.load %arg2[%c0_23, %c0_24, %c64] : memref<1x8x96xbf16, #tpu.memory_space<vmem>>, vector<1x8x8xbf16>
    %55 = vector.shape_cast %54 : vector<1x8x8xbf16> to vector<8x8xbf16>
    %c0_25 = arith.constant 0 : index
    %c0_26 = arith.constant 0 : index
    %c0_27 = arith.constant 0 : index
    %c0_28 = arith.constant 0 : index
    %56 = vector.load %arg7[%c0_25, %c0_26, %c0_27, %c0_28] : memref<1x4x8x8xbf16, #tpu.memory_space<vmem>>, vector<1x1x8x8xbf16>
    %57 = vector.shape_cast %56 : vector<1x1x8x8xbf16> to vector<8x8xbf16>
    %58 = vector.shape_cast %55 : vector<8x8xbf16> to vector<1x1x8x8xbf16>
    tpu.vector_store %arg7[%c0_25, %c0_26, %c0_27, %c0_28], %58 {strides = array<i32>} : memref<1x4x8x8xbf16, #tpu.memory_space<vmem>>, vector<1x1x8x8xbf16>,
    %c0_29 = arith.constant 0 : index
    %c0_30 = arith.constant 0 : index
    %c8 = arith.constant 8 : index
    %59 = vector.load %arg2[%c0_29, %c0_30, %c8] : memref<1x8x96xbf16, #tpu.memory_space<vmem>>, vector<1x8x8xbf16>
    %60 = vector.shape_cast %59 : vector<1x8x8xbf16> to vector<8x8xbf16>
    %61 = arith.extf %60 : vector<8x8xbf16> to vector<8x8xf32>
    %c0_31 = arith.constant 0 : index
    %c0_32 = arith.constant 0 : index
    %c40 = arith.constant 40 : index
    %62 = vector.load %arg2[%c0_31, %c0_32, %c40] : memref<1x8x96xbf16, #tpu.memory_space<vmem>>, vector<1x8x8xbf16>
    %63 = vector.shape_cast %62 : vector<1x8x8xbf16> to vector<8x8xbf16>
    %64 = arith.extf %63 : vector<8x8xbf16> to vector<8x8xf32>
    %65 = arith.mulf %61, %61 : vector<8x8xf32>
    %cst_33 = arith.constant dense<0.000000e+00> : vector<8xf32>
    %66 = vector.multi_reduction <add>, %65, %cst_33 [1] : vector<8x8xf32> to vector<8xf32>
    %67 = vector.shape_cast %66 : vector<8xf32> to vector<8x1xf32>
    %cst_34 = arith.constant 8.000000e+00 : f32
    %68 = vector.broadcast %cst_34 : f32 to vector<8x1xf32>
    %69 = arith.divf %67, %68 : vector<8x1xf32>
    %cst_35 = arith.constant 1.1920929E-7 : f32
    %70 = vector.broadcast %cst_35 : f32 to vector<8x1xf32>
    %71 = arith.addf %69, %70 : vector<8x1xf32>
    %72 = math.rsqrt %71 : vector<8x1xf32>
    %cst_36 = arith.constant 0.353553385 : f32
    %73 = vector.broadcast %cst_36 : f32 to vector<8x1xf32>
    %74 = arith.mulf %72, %73 : vector<8x1xf32>
    %75 = vector.broadcast %74 : vector<8x1xf32> to vector<8x8xf32>
    %76 = arith.mulf %61, %75 : vector<8x8xf32>
    %77 = arith.mulf %76, %1 : vector<8x8xf32>
    %78 = vector.extract_strided_slice %76 {offsets = [0, 4], sizes = [8, 4], strides = [1, 1]} : vector<8x8xf32> to vector<8x4xf32>
    %79 = vector.extract_strided_slice %76 {offsets = [0, 0], sizes = [8, 4], strides = [1, 1]} : vector<8x8xf32> to vector<8x4xf32>
    %80 = tpu.concatenate %78, %79 in 1 : vector<8x4xf32>, vector<8x4xf32> -> vector<8x8xf32>
    %81 = arith.mulf %80, %3 : vector<8x8xf32>
    %82 = arith.addf %77, %81 : vector<8x8xf32>
    %83 = arith.truncf %82 : vector<8x8xf32> to vector<8x8xbf16>
    %c0_37 = arith.constant 0 : index
    %c1 = arith.constant 1 : index
    %c0_38 = arith.constant 0 : index
    %c0_39 = arith.constant 0 : index
    %84 = vector.load %arg5[%c0_37, %c1, %c0_38, %c0_39] : memref<1x4x8x8xbf16, #tpu.memory_space<vmem>>, vector<1x1x8x8xbf16>
    %85 = vector.shape_cast %84 : vector<1x1x8x8xbf16> to vector<8x8xbf16>
    %86 = vector.shape_cast %83 : vector<8x8xbf16> to vector<1x1x8x8xbf16>
    tpu.vector_store %arg5[%c0_37, %c1, %c0_38, %c0_39], %86 {strides = array<i32>} : memref<1x4x8x8xbf16, #tpu.memory_space<vmem>>, vector<1x1x8x8xbf16>,
    %87 = arith.mulf %64, %64 : vector<8x8xf32>
    %cst_40 = arith.constant dense<0.000000e+00> : vector<8xf32>
    %88 = vector.multi_reduction <add>, %87, %cst_40 [1] : vector<8x8xf32> to vector<8xf32>
    %89 = vector.shape_cast %88 : vector<8xf32> to vector<8x1xf32>
    %cst_41 = arith.constant 8.000000e+00 : f32
    %90 = vector.broadcast %cst_41 : f32 to vector<8x1xf32>
    %91 = arith.divf %89, %90 : vector<8x1xf32>
    %cst_42 = arith.constant 1.1920929E-7 : f32
    %92 = vector.broadcast %cst_42 : f32 to vector<8x1xf32>
    %93 = arith.addf %91, %92 : vector<8x1xf32>
    %94 = math.rsqrt %93 : vector<8x1xf32>
    %cst_43 = arith.constant 1.000000e+00 : f32
    %95 = vector.broadcast %cst_43 : f32 to vector<8x1xf32>
    %96 = arith.mulf %94, %95 : vector<8x1xf32>
    %97 = vector.broadcast %96 : vector<8x1xf32> to vector<8x8xf32>
    %98 = arith.mulf %64, %97 : vector<8x8xf32>
    %99 = arith.mulf %98, %1 : vector<8x8xf32>
    %100 = vector.extract_strided_slice %98 {offsets = [0, 4], sizes = [8, 4], strides = [1, 1]} : vector<8x8xf32> to vector<8x4xf32>
    %101 = vector.extract_strided_slice %98 {offsets = [0, 0], sizes = [8, 4], strides = [1, 1]} : vector<8x8xf32> to vector<8x4xf32>
    %102 = tpu.concatenate %100, %101 in 1 : vector<8x4xf32>, vector<8x4xf32> -> vector<8x8xf32>
    %103 = arith.mulf %102, %3 : vector<8x8xf32>
    %104 = arith.addf %99, %103 : vector<8x8xf32>
    %105 = arith.truncf %104 : vector<8x8xf32> to vector<8x8xbf16>
    %c0_44 = arith.constant 0 : index
    %c1_45 = arith.constant 1 : index
    %c0_46 = arith.constant 0 : index
    %c0_47 = arith.constant 0 : index
    %106 = vector.load %arg6[%c0_44, %c1_45, %c0_46, %c0_47] : memref<1x4x8x8xbf16, #tpu.memory_space<vmem>>, vector<1x1x8x8xbf16>
    %107 = vector.shape_cast %106 : vector<1x1x8x8xbf16> to vector<8x8xbf16>
    %108 = vector.shape_cast %105 : vector<8x8xbf16> to vector<1x1x8x8xbf16>
    tpu.vector_store %arg6[%c0_44, %c1_45, %c0_46, %c0_47], %108 {strides = array<i32>} : memref<1x4x8x8xbf16, #tpu.memory_space<vmem>>, vector<1x1x8x8xbf16>,
    %c0_48 = arith.constant 0 : index
    %c0_49 = arith.constant 0 : index
    %c72 = arith.constant 72 : index
    %109 = vector.load %arg2[%c0_48, %c0_49, %c72] : memref<1x8x96xbf16, #tpu.memory_space<vmem>>, vector<1x8x8xbf16>
    %110 = vector.shape_cast %109 : vector<1x8x8xbf16> to vector<8x8xbf16>
    %c0_50 = arith.constant 0 : index
    %c1_51 = arith.constant 1 : index
    %c0_52 = arith.constant 0 : index
    %c0_53 = arith.constant 0 : index
    %111 = vector.load %arg7[%c0_50, %c1_51, %c0_52, %c0_53] : memref<1x4x8x8xbf16, #tpu.memory_space<vmem>>, vector<1x1x8x8xbf16>
    %112 = vector.shape_cast %111 : vector<1x1x8x8xbf16> to vector<8x8xbf16>
    %113 = vector.shape_cast %110 : vector<8x8xbf16> to vector<1x1x8x8xbf16>
    tpu.vector_store %arg7[%c0_50, %c1_51, %c0_52, %c0_53], %113 {strides = array<i32>} : memref<1x4x8x8xbf16, #tpu.memory_space<vmem>>, vector<1x1x8x8xbf16>,
    %c0_54 = arith.constant 0 : index
    %c0_55 = arith.constant 0 : index
    %c16 = arith.constant 16 : index
    %114 = vector.load %arg2[%c0_54, %c0_55, %c16] : memref<1x8x96xbf16, #tpu.memory_space<vmem>>, vector<1x8x8xbf16>
    %115 = vector.shape_cast %114 : vector<1x8x8xbf16> to vector<8x8xbf16>
    %116 = arith.extf %115 : vector<8x8xbf16> to vector<8x8xf32>
    %c0_56 = arith.constant 0 : index
    %c0_57 = arith.constant 0 : index
    %c48 = arith.constant 48 : index
    %117 = vector.load %arg2[%c0_56, %c0_57, %c48] : memref<1x8x96xbf16, #tpu.memory_space<vmem>>, vector<1x8x8xbf16>
    %118 = vector.shape_cast %117 : vector<1x8x8xbf16> to vector<8x8xbf16>
    %119 = arith.extf %118 : vector<8x8xbf16> to vector<8x8xf32>
    %120 = arith.mulf %116, %116 : vector<8x8xf32>
    %cst_58 = arith.constant dense<0.000000e+00> : vector<8xf32>
    %121 = vector.multi_reduction <add>, %120, %cst_58 [1] : vector<8x8xf32> to vector<8xf32>
    %122 = vector.shape_cast %121 : vector<8xf32> to vector<8x1xf32>
    %cst_59 = arith.constant 8.000000e+00 : f32
    %123 = vector.broadcast %cst_59 : f32 to vector<8x1xf32>
    %124 = arith.divf %122, %123 : vector<8x1xf32>
    %cst_60 = arith.constant 1.1920929E-7 : f32
    %125 = vector.broadcast %cst_60 : f32 to vector<8x1xf32>
    %126 = arith.addf %124, %125 : vector<8x1xf32>
    %127 = math.rsqrt %126 : vector<8x1xf32>
    %cst_61 = arith.constant 0.353553385 : f32
    %128 = vector.broadcast %cst_61 : f32 to vector<8x1xf32>
    %129 = arith.mulf %127, %128 : vector<8x1xf32>
    %130 = vector.broadcast %129 : vector<8x1xf32> to vector<8x8xf32>
    %131 = arith.mulf %116, %130 : vector<8x8xf32>
    %132 = arith.mulf %131, %1 : vector<8x8xf32>
    %133 = vector.extract_strided_slice %131 {offsets = [0, 4], sizes = [8, 4], strides = [1, 1]} : vector<8x8xf32> to vector<8x4xf32>
    %134 = vector.extract_strided_slice %131 {offsets = [0, 0], sizes = [8, 4], strides = [1, 1]} : vector<8x8xf32> to vector<8x4xf32>
    %135 = tpu.concatenate %133, %134 in 1 : vector<8x4xf32>, vector<8x4xf32> -> vector<8x8xf32>
    %136 = arith.mulf %135, %3 : vector<8x8xf32>
    %137 = arith.addf %132, %136 : vector<8x8xf32>
    %138 = arith.truncf %137 : vector<8x8xf32> to vector<8x8xbf16>
    %c0_62 = arith.constant 0 : index
    %c2 = arith.constant 2 : index
    %c0_63 = arith.constant 0 : index
    %c0_64 = arith.constant 0 : index
    %139 = vector.load %arg5[%c0_62, %c2, %c0_63, %c0_64] : memref<1x4x8x8xbf16, #tpu.memory_space<vmem>>, vector<1x1x8x8xbf16>
    %140 = vector.shape_cast %139 : vector<1x1x8x8xbf16> to vector<8x8xbf16>
    %141 = vector.shape_cast %138 : vector<8x8xbf16> to vector<1x1x8x8xbf16>
    tpu.vector_store %arg5[%c0_62, %c2, %c0_63, %c0_64], %141 {strides = array<i32>} : memref<1x4x8x8xbf16, #tpu.memory_space<vmem>>, vector<1x1x8x8xbf16>,
    %142 = arith.mulf %119, %119 : vector<8x8xf32>
    %cst_65 = arith.constant dense<0.000000e+00> : vector<8xf32>
    %143 = vector.multi_reduction <add>, %142, %cst_65 [1] : vector<8x8xf32> to vector<8xf32>
    %144 = vector.shape_cast %143 : vector<8xf32> to vector<8x1xf32>
    %cst_66 = arith.constant 8.000000e+00 : f32
    %145 = vector.broadcast %cst_66 : f32 to vector<8x1xf32>
    %146 = arith.divf %144, %145 : vector<8x1xf32>
    %cst_67 = arith.constant 1.1920929E-7 : f32
    %147 = vector.broadcast %cst_67 : f32 to vector<8x1xf32>
    %148 = arith.addf %146, %147 : vector<8x1xf32>
    %149 = math.rsqrt %148 : vector<8x1xf32>
    %cst_68 = arith.constant 1.000000e+00 : f32
    %150 = vector.broadcast %cst_68 : f32 to vector<8x1xf32>
    %151 = arith.mulf %149, %150 : vector<8x1xf32>
    %152 = vector.broadcast %151 : vector<8x1xf32> to vector<8x8xf32>
    %153 = arith.mulf %119, %152 : vector<8x8xf32>
    %154 = arith.mulf %153, %1 : vector<8x8xf32>
    %155 = vector.extract_strided_slice %153 {offsets = [0, 4], sizes = [8, 4], strides = [1, 1]} : vector<8x8xf32> to vector<8x4xf32>
    %156 = vector.extract_strided_slice %153 {offsets = [0, 0], sizes = [8, 4], strides = [1, 1]} : vector<8x8xf32> to vector<8x4xf32>
    %157 = tpu.concatenate %155, %156 in 1 : vector<8x4xf32>, vector<8x4xf32> -> vector<8x8xf32>
    %158 = arith.mulf %157, %3 : vector<8x8xf32>
    %159 = arith.addf %154, %158 : vector<8x8xf32>
    %160 = arith.truncf %159 : vector<8x8xf32> to vector<8x8xbf16>
    %c0_69 = arith.constant 0 : index
    %c2_70 = arith.constant 2 : index
    %c0_71 = arith.constant 0 : index
    %c0_72 = arith.constant 0 : index
    %161 = vector.load %arg6[%c0_69, %c2_70, %c0_71, %c0_72] : memref<1x4x8x8xbf16, #tpu.memory_space<vmem>>, vector<1x1x8x8xbf16>
    %162 = vector.shape_cast %161 : vector<1x1x8x8xbf16> to vector<8x8xbf16>
    %163 = vector.shape_cast %160 : vector<8x8xbf16> to vector<1x1x8x8xbf16>
    tpu.vector_store %arg6[%c0_69, %c2_70, %c0_71, %c0_72], %163 {strides = array<i32>} : memref<1x4x8x8xbf16, #tpu.memory_space<vmem>>, vector<1x1x8x8xbf16>,
    %c0_73 = arith.constant 0 : index
    %c0_74 = arith.constant 0 : index
    %c80 = arith.constant 80 : index
    %164 = vector.load %arg2[%c0_73, %c0_74, %c80] : memref<1x8x96xbf16, #tpu.memory_space<vmem>>, vector<1x8x8xbf16>
    %165 = vector.shape_cast %164 : vector<1x8x8xbf16> to vector<8x8xbf16>
    %c0_75 = arith.constant 0 : index
    %c2_76 = arith.constant 2 : index
    %c0_77 = arith.constant 0 : index
    %c0_78 = arith.constant 0 : index
    %166 = vector.load %arg7[%c0_75, %c2_76, %c0_77, %c0_78] : memref<1x4x8x8xbf16, #tpu.memory_space<vmem>>, vector<1x1x8x8xbf16>
    %167 = vector.shape_cast %166 : vector<1x1x8x8xbf16> to vector<8x8xbf16>
    %168 = vector.shape_cast %165 : vector<8x8xbf16> to vector<1x1x8x8xbf16>
    tpu.vector_store %arg7[%c0_75, %c2_76, %c0_77, %c0_78], %168 {strides = array<i32>} : memref<1x4x8x8xbf16, #tpu.memory_space<vmem>>, vector<1x1x8x8xbf16>,
    %c0_79 = arith.constant 0 : index
    %c0_80 = arith.constant 0 : index
    %c24 = arith.constant 24 : index
    %169 = vector.load %arg2[%c0_79, %c0_80, %c24] : memref<1x8x96xbf16, #tpu.memory_space<vmem>>, vector<1x8x8xbf16>
    %170 = vector.shape_cast %169 : vector<1x8x8xbf16> to vector<8x8xbf16>
    %171 = arith.extf %170 : vector<8x8xbf16> to vector<8x8xf32>
    %c0_81 = arith.constant 0 : index
    %c0_82 = arith.constant 0 : index
    %c56 = arith.constant 56 : index
    %172 = vector.load %arg2[%c0_81, %c0_82, %c56] : memref<1x8x96xbf16, #tpu.memory_space<vmem>>, vector<1x8x8xbf16>
    %173 = vector.shape_cast %172 : vector<1x8x8xbf16> to vector<8x8xbf16>
    %174 = arith.extf %173 : vector<8x8xbf16> to vector<8x8xf32>
    %175 = arith.mulf %171, %171 : vector<8x8xf32>
    %cst_83 = arith.constant dense<0.000000e+00> : vector<8xf32>
    %176 = vector.multi_reduction <add>, %175, %cst_83 [1] : vector<8x8xf32> to vector<8xf32>
    %177 = vector.shape_cast %176 : vector<8xf32> to vector<8x1xf32>
    %cst_84 = arith.constant 8.000000e+00 : f32
    %178 = vector.broadcast %cst_84 : f32 to vector<8x1xf32>
    %179 = arith.divf %177, %178 : vector<8x1xf32>
    %cst_85 = arith.constant 1.1920929E-7 : f32
    %180 = vector.broadcast %cst_85 : f32 to vector<8x1xf32>
    %181 = arith.addf %179, %180 : vector<8x1xf32>
    %182 = math.rsqrt %181 : vector<8x1xf32>
    %cst_86 = arith.constant 0.353553385 : f32
    %183 = vector.broadcast %cst_86 : f32 to vector<8x1xf32>
    %184 = arith.mulf %182, %183 : vector<8x1xf32>
    %185 = vector.broadcast %184 : vector<8x1xf32> to vector<8x8xf32>
    %186 = arith.mulf %171, %185 : vector<8x8xf32>
    %187 = arith.mulf %186, %1 : vector<8x8xf32>
    %188 = vector.extract_strided_slice %186 {offsets = [0, 4], sizes = [8, 4], strides = [1, 1]} : vector<8x8xf32> to vector<8x4xf32>
    %189 = vector.extract_strided_slice %186 {offsets = [0, 0], sizes = [8, 4], strides = [1, 1]} : vector<8x8xf32> to vector<8x4xf32>
    %190 = tpu.concatenate %188, %189 in 1 : vector<8x4xf32>, vector<8x4xf32> -> vector<8x8xf32>
    %191 = arith.mulf %190, %3 : vector<8x8xf32>
    %192 = arith.addf %187, %191 : vector<8x8xf32>
    %193 = arith.truncf %192 : vector<8x8xf32> to vector<8x8xbf16>
    %c0_87 = arith.constant 0 : index
    %c3 = arith.constant 3 : index
    %c0_88 = arith.constant 0 : index
    %c0_89 = arith.constant 0 : index
    %194 = vector.load %arg5[%c0_87, %c3, %c0_88, %c0_89] : memref<1x4x8x8xbf16, #tpu.memory_space<vmem>>, vector<1x1x8x8xbf16>
    %195 = vector.shape_cast %194 : vector<1x1x8x8xbf16> to vector<8x8xbf16>
    %196 = vector.shape_cast %193 : vector<8x8xbf16> to vector<1x1x8x8xbf16>
    tpu.vector_store %arg5[%c0_87, %c3, %c0_88, %c0_89], %196 {strides = array<i32>} : memref<1x4x8x8xbf16, #tpu.memory_space<vmem>>, vector<1x1x8x8xbf16>,
    %197 = arith.mulf %174, %174 : vector<8x8xf32>
    %cst_90 = arith.constant dense<0.000000e+00> : vector<8xf32>
    %198 = vector.multi_reduction <add>, %197, %cst_90 [1] : vector<8x8xf32> to vector<8xf32>
    %199 = vector.shape_cast %198 : vector<8xf32> to vector<8x1xf32>
    %cst_91 = arith.constant 8.000000e+00 : f32
    %200 = vector.broadcast %cst_91 : f32 to vector<8x1xf32>
    %201 = arith.divf %199, %200 : vector<8x1xf32>
    %cst_92 = arith.constant 1.1920929E-7 : f32
    %202 = vector.broadcast %cst_92 : f32 to vector<8x1xf32>
    %203 = arith.addf %201, %202 : vector<8x1xf32>
    %204 = math.rsqrt %203 : vector<8x1xf32>
    %cst_93 = arith.constant 1.000000e+00 : f32
    %205 = vector.broadcast %cst_93 : f32 to vector<8x1xf32>
    %206 = arith.mulf %204, %205 : vector<8x1xf32>
    %207 = vector.broadcast %206 : vector<8x1xf32> to vector<8x8xf32>
    %208 = arith.mulf %174, %207 : vector<8x8xf32>
    %209 = arith.mulf %208, %1 : vector<8x8xf32>
    %210 = vector.extract_strided_slice %208 {offsets = [0, 4], sizes = [8, 4], strides = [1, 1]} : vector<8x8xf32> to vector<8x4xf32>
    %211 = vector.extract_strided_slice %208 {offsets = [0, 0], sizes = [8, 4], strides = [1, 1]} : vector<8x8xf32> to vector<8x4xf32>
    %212 = tpu.concatenate %210, %211 in 1 : vector<8x4xf32>, vector<8x4xf32> -> vector<8x8xf32>
    %213 = arith.mulf %212, %3 : vector<8x8xf32>
    %214 = arith.addf %209, %213 : vector<8x8xf32>
    %215 = arith.truncf %214 : vector<8x8xf32> to vector<8x8xbf16>
    %c0_94 = arith.constant 0 : index
    %c3_95 = arith.constant 3 : index
    %c0_96 = arith.constant 0 : index
    %c0_97 = arith.constant 0 : index
    %216 = vector.load %arg6[%c0_94, %c3_95, %c0_96, %c0_97] : memref<1x4x8x8xbf16, #tpu.memory_space<vmem>>, vector<1x1x8x8xbf16>
    %217 = vector.shape_cast %216 : vector<1x1x8x8xbf16> to vector<8x8xbf16>
    %218 = vector.shape_cast %215 : vector<8x8xbf16> to vector<1x1x8x8xbf16>
    tpu.vector_store %arg6[%c0_94, %c3_95, %c0_96, %c0_97], %218 {strides = array<i32>} : memref<1x4x8x8xbf16, #tpu.memory_space<vmem>>, vector<1x1x8x8xbf16>,
    %c0_98 = arith.constant 0 : index
    %c0_99 = arith.constant 0 : index
    %c88 = arith.constant 88 : index
    %219 = vector.load %arg2[%c0_98, %c0_99, %c88] : memref<1x8x96xbf16, #tpu.memory_space<vmem>>, vector<1x8x8xbf16>
    %220 = vector.shape_cast %219 : vector<1x8x8xbf16> to vector<8x8xbf16>
    %c0_100 = arith.constant 0 : index
    %c3_101 = arith.constant 3 : index
    %c0_102 = arith.constant 0 : index
    %c0_103 = arith.constant 0 : index
    %221 = vector.load %arg7[%c0_100, %c3_101, %c0_102, %c0_103] : memref<1x4x8x8xbf16, #tpu.memory_space<vmem>>, vector<1x1x8x8xbf16>
    %222 = vector.shape_cast %221 : vector<1x1x8x8xbf16> to vector<8x8xbf16>
    %223 = vector.shape_cast %220 : vector<8x8xbf16> to vector<1x1x8x8xbf16>
    tpu.vector_store %arg7[%c0_100, %c3_101, %c0_102, %c0_103], %223 {strides = array<i32>} : memref<1x4x8x8xbf16, #tpu.memory_space<vmem>>, vector<1x1x8x8xbf16>,
    return
  }
  func.func @transform_0(%arg0: i32, %arg1: i32) -> (i32, i32, i32) {
    %c0_i32 = arith.constant 0 : i32
    %c0_i32_0 = arith.constant 0 : i32
    return %arg0, %arg1, %c0_i32 : i32, i32, i32
  }
  func.func @transform_1(%arg0: i32, %arg1: i32) -> (i32, i32) {
    %c0_i32 = arith.constant 0 : i32
    %c0_i32_0 = arith.constant 0 : i32
    return %arg1, %c0_i32 : i32, i32
  }
  func.func @transform_2(%arg0: i32, %arg1: i32) -> (i32, i32) {
    %c0_i32 = arith.constant 0 : i32
    %c0_i32_0 = arith.constant 0 : i32
    return %arg1, %c0_i32 : i32, i32
  }
  func.func @transform_3(%arg0: i32, %arg1: i32) -> (i32, i32, i32, i32) {
    %c0_i32 = arith.constant 0 : i32
    %c0_i32_0 = arith.constant 0 : i32
    %c0_i32_1 = arith.constant 0 : i32
    return %arg0, %c0_i32, %arg1, %c0_i32_0 : i32, i32, i32, i32
  }
  func.func @transform_4(%arg0: i32, %arg1: i32) -> (i32, i32, i32, i32) {
    %c0_i32 = arith.constant 0 : i32
    %c0_i32_0 = arith.constant 0 : i32
    %c0_i32_1 = arith.constant 0 : i32
    return %arg0, %c0_i32, %arg1, %c0_i32_0 : i32, i32, i32, i32
  }
  func.func @transform_5(%arg0: i32, %arg1: i32) -> (i32, i32, i32, i32) {
    %c0_i32 = arith.constant 0 : i32
    %c0_i32_0 = arith.constant 0 : i32
    %c0_i32_1 = arith.constant 0 : i32
    return %arg0, %c0_i32, %arg1, %c0_i32_0 : i32, i32, i32, i32
  }
}

module attributes {stable_mosaic.version = 11 : i64} {
  func.func @_matmul_bias_kernel(%arg0: i32, %arg1: i32, %arg2: i32, %arg3: memref<16x32xbf16, #tpu.memory_space<vmem>>, %arg4: memref<32x128xbf16, #tpu.memory_space<vmem>>, %arg5: memref<1x128xf32, #tpu.memory_space<vmem>>, %arg6: memref<16x128xbf16, #tpu.memory_space<vmem>>, %arg7: memref<16x128xf32, #tpu.memory_space<vmem>>) attributes {dimension_semantics = [#tpu.dimension_semantics<parallel>, #tpu.dimension_semantics<parallel>, #tpu.dimension_semantics<arbitrary>], iteration_bounds = array<i64: 1, 1, 1>, scalar_prefetch = 0 : i64, scratch_operands = 1 : i64, tpu.core_type = #tpu.core_type<tc>, window_params = [{transform_indices = @transform_0, window_bounds = array<i64: 16, 32>}, {transform_indices = @transform_1, window_bounds = array<i64: 32, 128>}, {transform_indices = @transform_2, window_bounds = array<i64: 1, 128>}, {transform_indices = @transform_3, window_bounds = array<i64: 16, 128>}]} {
    %c0_i32 = arith.constant 0 : i32
    %0 = arith.cmpi eq, %arg2, %c0_i32 : i32
    %1 = arith.extui %0 : i1 to i32
    %c0_i32_0 = arith.constant 0 : i32
    %2 = arith.cmpi ne, %1, %c0_i32_0 : i32
    scf.if %2 {
      %cst_10 = arith.constant 0.000000e+00 : f32
      %12 = vector.broadcast %cst_10 : f32 to vector<16x128xf32>
      %c0_11 = arith.constant 0 : index
      %c0_12 = arith.constant 0 : index
      %13 = vector.load %arg7[%c0_11, %c0_12] : memref<16x128xf32, #tpu.memory_space<vmem>>, vector<16x128xf32>
      tpu.vector_store %arg7[%c0_11, %c0_12], %12 {strides = array<i32>} : memref<16x128xf32, #tpu.memory_space<vmem>>, vector<16x128xf32>,
    } else {
    }
    %c0 = arith.constant 0 : index
    %c0_1 = arith.constant 0 : index
    %3 = vector.load %arg7[%c0, %c0_1] : memref<16x128xf32, #tpu.memory_space<vmem>>, vector<16x128xf32>
    %c0_2 = arith.constant 0 : index
    %c0_3 = arith.constant 0 : index
    %4 = vector.load %arg3[%c0_2, %c0_3] : memref<16x32xbf16, #tpu.memory_space<vmem>>, vector<16x32xbf16>
    %c0_4 = arith.constant 0 : index
    %c0_5 = arith.constant 0 : index
    %5 = vector.load %arg4[%c0_4, %c0_5] : memref<32x128xbf16, #tpu.memory_space<vmem>>, vector<32x128xbf16>
    %cst = arith.constant dense<0.000000e+00> : vector<16x128xf32>
    %6 = tpu.matmul %4, %5, %cst {dimension_numbers = #tpu.dot_dimension_numbers<[1], [0], [0], [1], [0, 0, 1, 1], [], []>} : vector<16x32xbf16>, vector<32x128xbf16>, vector<16x128xf32> -> vector<16x128xf32>
    %7 = arith.addf %3, %6 : vector<16x128xf32>
    %c0_6 = arith.constant 0 : index
    %c0_7 = arith.constant 0 : index
    %8 = vector.load %arg7[%c0_6, %c0_7] : memref<16x128xf32, #tpu.memory_space<vmem>>, vector<16x128xf32>
    tpu.vector_store %arg7[%c0_6, %c0_7], %7 {strides = array<i32>} : memref<16x128xf32, #tpu.memory_space<vmem>>, vector<16x128xf32>,
    %c0_i32_8 = arith.constant 0 : i32
    %9 = arith.cmpi eq, %arg2, %c0_i32_8 : i32
    %10 = arith.extui %9 : i1 to i32
    %c0_i32_9 = arith.constant 0 : i32
    %11 = arith.cmpi ne, %10, %c0_i32_9 : i32
    scf.if %11 {
      %c0_10 = arith.constant 0 : index
      %c0_11 = arith.constant 0 : index
      %12 = vector.load %arg7[%c0_10, %c0_11] : memref<16x128xf32, #tpu.memory_space<vmem>>, vector<16x128xf32>
      %c0_12 = arith.constant 0 : index
      %c0_13 = arith.constant 0 : index
      %13 = vector.load %arg5[%c0_12, %c0_13] : memref<1x128xf32, #tpu.memory_space<vmem>>, vector<1x128xf32>
      %14 = vector.broadcast %13 : vector<1x128xf32> to vector<16x128xf32>
      %15 = arith.addf %12, %14 : vector<16x128xf32>
      %16 = arith.truncf %15 : vector<16x128xf32> to vector<16x128xbf16>
      %c0_14 = arith.constant 0 : index
      %c0_15 = arith.constant 0 : index
      %17 = vector.load %arg6[%c0_14, %c0_15] : memref<16x128xbf16, #tpu.memory_space<vmem>>, vector<16x128xbf16>
      tpu.vector_store %arg6[%c0_14, %c0_15], %16 {strides = array<i32>} : memref<16x128xbf16, #tpu.memory_space<vmem>>, vector<16x128xbf16>,
    } else {
    }
    return
  }
  func.func @transform_0(%arg0: i32, %arg1: i32, %arg2: i32) -> (i32, i32) {
    %c0_i32 = arith.constant 0 : i32
    return %arg0, %arg2 : i32, i32
  }
  func.func @transform_1(%arg0: i32, %arg1: i32, %arg2: i32) -> (i32, i32) {
    %c0_i32 = arith.constant 0 : i32
    return %arg2, %arg1 : i32, i32
  }
  func.func @transform_2(%arg0: i32, %arg1: i32, %arg2: i32) -> (i32, i32) {
    %c0_i32 = arith.constant 0 : i32
    %c0_i32_0 = arith.constant 0 : i32
    return %c0_i32, %arg1 : i32, i32
  }
  func.func @transform_3(%arg0: i32, %arg1: i32, %arg2: i32) -> (i32, i32) {
    %c0_i32 = arith.constant 0 : i32
    return %arg0, %arg1 : i32, i32
  }
}

module attributes {stable_mosaic.version = 11 : i64} {
  func.func @_matmul_kernel(%arg0: i32, %arg1: i32, %arg2: i32, %arg3: memref<16x32xbf16, #tpu.memory_space<vmem>>, %arg4: memref<32x32xbf16, #tpu.memory_space<vmem>>, %arg5: memref<16x32xf32, #tpu.memory_space<vmem>>, %arg6: memref<16x32xf32, #tpu.memory_space<vmem>>) attributes {dimension_semantics = [#tpu.dimension_semantics<parallel>, #tpu.dimension_semantics<parallel>, #tpu.dimension_semantics<arbitrary>], iteration_bounds = array<i64: 1, 1, 1>, scalar_prefetch = 0 : i64, scratch_operands = 1 : i64, tpu.core_type = #tpu.core_type<tc>, window_params = [{transform_indices = @transform_0, window_bounds = array<i64: 16, 32>}, {transform_indices = @transform_1, window_bounds = array<i64: 32, 32>}, {transform_indices = @transform_2, window_bounds = array<i64: 16, 32>}]} {
    %c0_i32 = arith.constant 0 : i32
    %0 = arith.cmpi eq, %arg2, %c0_i32 : i32
    %1 = arith.extui %0 : i1 to i32
    %c0_i32_0 = arith.constant 0 : i32
    %2 = arith.cmpi ne, %1, %c0_i32_0 : i32
    scf.if %2 {
      %cst_10 = arith.constant 0.000000e+00 : f32
      %12 = vector.broadcast %cst_10 : f32 to vector<16x32xf32>
      %c0_11 = arith.constant 0 : index
      %c0_12 = arith.constant 0 : index
      %13 = vector.load %arg6[%c0_11, %c0_12] : memref<16x32xf32, #tpu.memory_space<vmem>>, vector<16x32xf32>
      tpu.vector_store %arg6[%c0_11, %c0_12], %12 {strides = array<i32>} : memref<16x32xf32, #tpu.memory_space<vmem>>, vector<16x32xf32>,
    } else {
    }
    %c0 = arith.constant 0 : index
    %c0_1 = arith.constant 0 : index
    %3 = vector.load %arg6[%c0, %c0_1] : memref<16x32xf32, #tpu.memory_space<vmem>>, vector<16x32xf32>
    %c0_2 = arith.constant 0 : index
    %c0_3 = arith.constant 0 : index
    %4 = vector.load %arg3[%c0_2, %c0_3] : memref<16x32xbf16, #tpu.memory_space<vmem>>, vector<16x32xbf16>
    %c0_4 = arith.constant 0 : index
    %c0_5 = arith.constant 0 : index
    %5 = vector.load %arg4[%c0_4, %c0_5] : memref<32x32xbf16, #tpu.memory_space<vmem>>, vector<32x32xbf16>
    %cst = arith.constant dense<0.000000e+00> : vector<16x32xf32>
    %6 = tpu.matmul %4, %5, %cst {dimension_numbers = #tpu.dot_dimension_numbers<[1], [0], [0], [1], [0, 0, 1, 1], [], []>} : vector<16x32xbf16>, vector<32x32xbf16>, vector<16x32xf32> -> vector<16x32xf32>
    %7 = arith.addf %3, %6 : vector<16x32xf32>
    %c0_6 = arith.constant 0 : index
    %c0_7 = arith.constant 0 : index
    %8 = vector.load %arg6[%c0_6, %c0_7] : memref<16x32xf32, #tpu.memory_space<vmem>>, vector<16x32xf32>
    tpu.vector_store %arg6[%c0_6, %c0_7], %7 {strides = array<i32>} : memref<16x32xf32, #tpu.memory_space<vmem>>, vector<16x32xf32>,
    %c0_i32_8 = arith.constant 0 : i32
    %9 = arith.cmpi eq, %arg2, %c0_i32_8 : i32
    %10 = arith.extui %9 : i1 to i32
    %c0_i32_9 = arith.constant 0 : i32
    %11 = arith.cmpi ne, %10, %c0_i32_9 : i32
    scf.if %11 {
      %c0_10 = arith.constant 0 : index
      %c0_11 = arith.constant 0 : index
      %12 = vector.load %arg6[%c0_10, %c0_11] : memref<16x32xf32, #tpu.memory_space<vmem>>, vector<16x32xf32>
      %c0_12 = arith.constant 0 : index
      %c0_13 = arith.constant 0 : index
      %13 = vector.load %arg5[%c0_12, %c0_13] : memref<16x32xf32, #tpu.memory_space<vmem>>, vector<16x32xf32>
      tpu.vector_store %arg5[%c0_12, %c0_13], %12 {strides = array<i32>} : memref<16x32xf32, #tpu.memory_space<vmem>>, vector<16x32xf32>,
    } else {
    }
    return
  }
  func.func @transform_0(%arg0: i32, %arg1: i32, %arg2: i32) -> (i32, i32) {
    %c0_i32 = arith.constant 0 : i32
    return %arg0, %arg2 : i32, i32
  }
  func.func @transform_1(%arg0: i32, %arg1: i32, %arg2: i32) -> (i32, i32) {
    %c0_i32 = arith.constant 0 : i32
    return %arg2, %arg1 : i32, i32
  }
  func.func @transform_2(%arg0: i32, %arg1: i32, %arg2: i32) -> (i32, i32) {
    %c0_i32 = arith.constant 0 : i32
    return %arg0, %arg1 : i32, i32
  }
}

module attributes {stable_mosaic.version = 11 : i64} {
  func.func @_matmul_bias_kernel(%arg0: i32, %arg1: i32, %arg2: i32, %arg3: memref<16x128xbf16, #tpu.memory_space<vmem>>, %arg4: memref<128x32xbf16, #tpu.memory_space<vmem>>, %arg5: memref<1x32xf32, #tpu.memory_space<vmem>>, %arg6: memref<16x32xf32, #tpu.memory_space<vmem>>, %arg7: memref<16x32xf32, #tpu.memory_space<vmem>>) attributes {dimension_semantics = [#tpu.dimension_semantics<parallel>, #tpu.dimension_semantics<parallel>, #tpu.dimension_semantics<arbitrary>], iteration_bounds = array<i64: 1, 1, 1>, scalar_prefetch = 0 : i64, scratch_operands = 1 : i64, tpu.core_type = #tpu.core_type<tc>, window_params = [{transform_indices = @transform_0, window_bounds = array<i64: 16, 128>}, {transform_indices = @transform_1, window_bounds = array<i64: 128, 32>}, {transform_indices = @transform_2, window_bounds = array<i64: 1, 32>}, {transform_indices = @transform_3, window_bounds = array<i64: 16, 32>}]} {
    %c0_i32 = arith.constant 0 : i32
    %0 = arith.cmpi eq, %arg2, %c0_i32 : i32
    %1 = arith.extui %0 : i1 to i32
    %c0_i32_0 = arith.constant 0 : i32
    %2 = arith.cmpi ne, %1, %c0_i32_0 : i32
    scf.if %2 {
      %cst_10 = arith.constant 0.000000e+00 : f32
      %12 = vector.broadcast %cst_10 : f32 to vector<16x32xf32>
      %c0_11 = arith.constant 0 : index
      %c0_12 = arith.constant 0 : index
      %13 = vector.load %arg7[%c0_11, %c0_12] : memref<16x32xf32, #tpu.memory_space<vmem>>, vector<16x32xf32>
      tpu.vector_store %arg7[%c0_11, %c0_12], %12 {strides = array<i32>} : memref<16x32xf32, #tpu.memory_space<vmem>>, vector<16x32xf32>,
    } else {
    }
    %c0 = arith.constant 0 : index
    %c0_1 = arith.constant 0 : index
    %3 = vector.load %arg7[%c0, %c0_1] : memref<16x32xf32, #tpu.memory_space<vmem>>, vector<16x32xf32>
    %c0_2 = arith.constant 0 : index
    %c0_3 = arith.constant 0 : index
    %4 = vector.load %arg3[%c0_2, %c0_3] : memref<16x128xbf16, #tpu.memory_space<vmem>>, vector<16x128xbf16>
    %c0_4 = arith.constant 0 : index
    %c0_5 = arith.constant 0 : index
    %5 = vector.load %arg4[%c0_4, %c0_5] : memref<128x32xbf16, #tpu.memory_space<vmem>>, vector<128x32xbf16>
    %cst = arith.constant dense<0.000000e+00> : vector<16x32xf32>
    %6 = tpu.matmul %4, %5, %cst {dimension_numbers = #tpu.dot_dimension_numbers<[1], [0], [0], [1], [0, 0, 1, 1], [], []>} : vector<16x128xbf16>, vector<128x32xbf16>, vector<16x32xf32> -> vector<16x32xf32>
    %7 = arith.addf %3, %6 : vector<16x32xf32>
    %c0_6 = arith.constant 0 : index
    %c0_7 = arith.constant 0 : index
    %8 = vector.load %arg7[%c0_6, %c0_7] : memref<16x32xf32, #tpu.memory_space<vmem>>, vector<16x32xf32>
    tpu.vector_store %arg7[%c0_6, %c0_7], %7 {strides = array<i32>} : memref<16x32xf32, #tpu.memory_space<vmem>>, vector<16x32xf32>,
    %c0_i32_8 = arith.constant 0 : i32
    %9 = arith.cmpi eq, %arg2, %c0_i32_8 : i32
    %10 = arith.extui %9 : i1 to i32
    %c0_i32_9 = arith.constant 0 : i32
    %11 = arith.cmpi ne, %10, %c0_i32_9 : i32
    scf.if %11 {
      %c0_10 = arith.constant 0 : index
      %c0_11 = arith.constant 0 : index
      %12 = vector.load %arg7[%c0_10, %c0_11] : memref<16x32xf32, #tpu.memory_space<vmem>>, vector<16x32xf32>
      %c0_12 = arith.constant 0 : index
      %c0_13 = arith.constant 0 : index
      %13 = vector.load %arg5[%c0_12, %c0_13] : memref<1x32xf32, #tpu.memory_space<vmem>>, vector<1x32xf32>
      %14 = vector.broadcast %13 : vector<1x32xf32> to vector<16x32xf32>
      %15 = arith.addf %12, %14 : vector<16x32xf32>
      %c0_14 = arith.constant 0 : index
      %c0_15 = arith.constant 0 : index
      %16 = vector.load %arg6[%c0_14, %c0_15] : memref<16x32xf32, #tpu.memory_space<vmem>>, vector<16x32xf32>
      tpu.vector_store %arg6[%c0_14, %c0_15], %15 {strides = array<i32>} : memref<16x32xf32, #tpu.memory_space<vmem>>, vector<16x32xf32>,
    } else {
    }
    return
  }
  func.func @transform_0(%arg0: i32, %arg1: i32, %arg2: i32) -> (i32, i32) {
    %c0_i32 = arith.constant 0 : i32
    return %arg0, %arg2 : i32, i32
  }
  func.func @transform_1(%arg0: i32, %arg1: i32, %arg2: i32) -> (i32, i32) {
    %c0_i32 = arith.constant 0 : i32
    return %arg2, %arg1 : i32, i32
  }
  func.func @transform_2(%arg0: i32, %arg1: i32, %arg2: i32) -> (i32, i32) {
    %c0_i32 = arith.constant 0 : i32
    %c0_i32_0 = arith.constant 0 : i32
    return %c0_i32, %arg1 : i32, i32
  }
  func.func @transform_3(%arg0: i32, %arg1: i32, %arg2: i32) -> (i32, i32) {
    %c0_i32 = arith.constant 0 : i32
    return %arg0, %arg1 : i32, i32
  }
}

module attributes {stable_mosaic.version = 11 : i64} {
  func.func @_matmul_kernel(%arg0: i32, %arg1: i32, %arg2: i32, %arg3: memref<2x32xbf16, #tpu.memory_space<vmem>>, %arg4: memref<32x64xbf16, #tpu.memory_space<vmem>>, %arg5: memref<2x64xf32, #tpu.memory_space<vmem>>, %arg6: memref<2x64xf32, #tpu.memory_space<vmem>>) attributes {dimension_semantics = [#tpu.dimension_semantics<parallel>, #tpu.dimension_semantics<parallel>, #tpu.dimension_semantics<arbitrary>], iteration_bounds = array<i64: 1, 1, 1>, scalar_prefetch = 0 : i64, scratch_operands = 1 : i64, tpu.core_type = #tpu.core_type<tc>, window_params = [{transform_indices = @transform_0, window_bounds = array<i64: 2, 32>}, {transform_indices = @transform_1, window_bounds = array<i64: 32, 64>}, {transform_indices = @transform_2, window_bounds = array<i64: 2, 64>}]} {
    %c0_i32 = arith.constant 0 : i32
    %0 = arith.cmpi eq, %arg2, %c0_i32 : i32
    %1 = arith.extui %0 : i1 to i32
    %c0_i32_0 = arith.constant 0 : i32
    %2 = arith.cmpi ne, %1, %c0_i32_0 : i32
    scf.if %2 {
      %cst_10 = arith.constant 0.000000e+00 : f32
      %12 = vector.broadcast %cst_10 : f32 to vector<2x64xf32>
      %c0_11 = arith.constant 0 : index
      %c0_12 = arith.constant 0 : index
      %13 = vector.load %arg6[%c0_11, %c0_12] : memref<2x64xf32, #tpu.memory_space<vmem>>, vector<2x64xf32>
      tpu.vector_store %arg6[%c0_11, %c0_12], %12 {strides = array<i32>} : memref<2x64xf32, #tpu.memory_space<vmem>>, vector<2x64xf32>,
    } else {
    }
    %c0 = arith.constant 0 : index
    %c0_1 = arith.constant 0 : index
    %3 = vector.load %arg6[%c0, %c0_1] : memref<2x64xf32, #tpu.memory_space<vmem>>, vector<2x64xf32>
    %c0_2 = arith.constant 0 : index
    %c0_3 = arith.constant 0 : index
    %4 = vector.load %arg3[%c0_2, %c0_3] : memref<2x32xbf16, #tpu.memory_space<vmem>>, vector<2x32xbf16>
    %c0_4 = arith.constant 0 : index
    %c0_5 = arith.constant 0 : index
    %5 = vector.load %arg4[%c0_4, %c0_5] : memref<32x64xbf16, #tpu.memory_space<vmem>>, vector<32x64xbf16>
    %cst = arith.constant dense<0.000000e+00> : vector<2x64xf32>
    %6 = tpu.matmul %4, %5, %cst {dimension_numbers = #tpu.dot_dimension_numbers<[1], [0], [0], [1], [0, 0, 1, 1], [], []>} : vector<2x32xbf16>, vector<32x64xbf16>, vector<2x64xf32> -> vector<2x64xf32>
    %7 = arith.addf %3, %6 : vector<2x64xf32>
    %c0_6 = arith.constant 0 : index
    %c0_7 = arith.constant 0 : index
    %8 = vector.load %arg6[%c0_6, %c0_7] : memref<2x64xf32, #tpu.memory_space<vmem>>, vector<2x64xf32>
    tpu.vector_store %arg6[%c0_6, %c0_7], %7 {strides = array<i32>} : memref<2x64xf32, #tpu.memory_space<vmem>>, vector<2x64xf32>,
    %c0_i32_8 = arith.constant 0 : i32
    %9 = arith.cmpi eq, %arg2, %c0_i32_8 : i32
    %10 = arith.extui %9 : i1 to i32
    %c0_i32_9 = arith.constant 0 : i32
    %11 = arith.cmpi ne, %10, %c0_i32_9 : i32
    scf.if %11 {
      %c0_10 = arith.constant 0 : index
      %c0_11 = arith.constant 0 : index
      %12 = vector.load %arg6[%c0_10, %c0_11] : memref<2x64xf32, #tpu.memory_space<vmem>>, vector<2x64xf32>
      %c0_12 = arith.constant 0 : index
      %c0_13 = arith.constant 0 : index
      %13 = vector.load %arg5[%c0_12, %c0_13] : memref<2x64xf32, #tpu.memory_space<vmem>>, vector<2x64xf32>
      tpu.vector_store %arg5[%c0_12, %c0_13], %12 {strides = array<i32>} : memref<2x64xf32, #tpu.memory_space<vmem>>, vector<2x64xf32>,
    } else {
    }
    return
  }
  func.func @transform_0(%arg0: i32, %arg1: i32, %arg2: i32) -> (i32, i32) {
    %c0_i32 = arith.constant 0 : i32
    return %arg0, %arg2 : i32, i32
  }
  func.func @transform_1(%arg0: i32, %arg1: i32, %arg2: i32) -> (i32, i32) {
    %c0_i32 = arith.constant 0 : i32
    return %arg2, %arg1 : i32, i32
  }
  func.func @transform_2(%arg0: i32, %arg1: i32, %arg2: i32) -> (i32, i32) {
    %c0_i32 = arith.constant 0 : i32
    return %arg0, %arg1 : i32, i32
  }
}

module attributes {stable_mosaic.version = 11 : i64} {
  func.func @_rmsnorm_kernel(%arg0: i32, %arg1: memref<2x32xf32, #tpu.memory_space<vmem>>, %arg2: memref<2x32xbf16, #tpu.memory_space<vmem>>) attributes {dimension_semantics = [#tpu.dimension_semantics<parallel>], iteration_bounds = array<i64: 1>, scalar_prefetch = 0 : i64, scratch_operands = 0 : i64, tpu.core_type = #tpu.core_type<tc>, window_params = [{transform_indices = @transform_0, window_bounds = array<i64: 2, 32>}, {transform_indices = @transform_1, window_bounds = array<i64: 2, 32>}]} {
    %c0 = arith.constant 0 : index
    %c0_0 = arith.constant 0 : index
    %0 = vector.load %arg1[%c0, %c0_0] : memref<2x32xf32, #tpu.memory_space<vmem>>, vector<2x32xf32>
    %1 = arith.mulf %0, %0 : vector<2x32xf32>
    %cst = arith.constant dense<0.000000e+00> : vector<2xf32>
    %2 = vector.multi_reduction <add>, %1, %cst [1] : vector<2x32xf32> to vector<2xf32>
    %3 = vector.shape_cast %2 : vector<2xf32> to vector<2x1xf32>
    %cst_1 = arith.constant 3.200000e+01 : f32
    %4 = vector.broadcast %cst_1 : f32 to vector<2x1xf32>
    %5 = arith.divf %3, %4 : vector<2x1xf32>
    %cst_2 = arith.constant 1.1920929E-7 : f32
    %6 = vector.broadcast %cst_2 : f32 to vector<2x1xf32>
    %7 = arith.addf %5, %6 : vector<2x1xf32>
    %8 = math.rsqrt %7 : vector<2x1xf32>
    %9 = vector.broadcast %8 : vector<2x1xf32> to vector<2x32xf32>
    %10 = arith.mulf %0, %9 : vector<2x32xf32>
    %11 = arith.truncf %10 : vector<2x32xf32> to vector<2x32xbf16>
    %c0_3 = arith.constant 0 : index
    %c0_4 = arith.constant 0 : index
    %12 = vector.load %arg2[%c0_3, %c0_4] : memref<2x32xbf16, #tpu.memory_space<vmem>>, vector<2x32xbf16>
    tpu.vector_store %arg2[%c0_3, %c0_4], %11 {strides = array<i32>} : memref<2x32xbf16, #tpu.memory_space<vmem>>, vector<2x32xbf16>,
    return
  }
  func.func @transform_0(%arg0: i32) -> (i32, i32) {
    %c0_i32 = arith.constant 0 : i32
    %c0_i32_0 = arith.constant 0 : i32
    return %arg0, %c0_i32 : i32, i32
  }
  func.func @transform_1(%arg0: i32) -> (i32, i32) {
    %c0_i32 = arith.constant 0 : i32
    %c0_i32_0 = arith.constant 0 : i32
    return %arg0, %c0_i32 : i32, i32
  }
}

</mosaic_0001>

<bundles_post_ra>
// kernel: gpt_forward.18
= control target key start
LH: loop header
LB: loop body
LE: loop exit
PB: predicated region body
PF: predicated region fallthrough
CT: control target
= control target key end

     0   :  { %vm12_vm0 = vcmask 261120   ;;  %vm36_vm1 = vcmask 257024   ;;  %s73_s0 = inlined_call_operand.vmem [shape: f32[16,32], index: 0, kind: input, shape index: {}]   ;;  %s74_s1 = inlined_call_operand.vmem [shape: bf16[16,32], index: 1, kind: output, shape index: {}]  }
   0x1   :  { %v8_v0 = vld [vmem:[%s73_s0] sm:$0xff]  ;;  %v9_v1 = vld [vmem:[%s73_s0 + $0x8] sm:$0xff] }
   0x2   :  { %v10_v2 = vmul.f32 %v8_v0, %v8_v0  ;;  %v11_v3 = vmul.f32 %v9_v1, %v9_v1 }
   0x4   :  { %v13_v4 = vsel %vm12_vm0, %v10_v2, 0.0  ;;  %v16_v5 = vsel %vm12_vm0, %v11_v3, 0.0 }
   0x5   :  { %14 = vadd.xlane.f32.xlu0 %v13_v4 }
   0x9   :  { %17 = vadd.xlane.f32.xlu0 %v16_v5 }
  0x92   :  { %v15_v6 = vpop.xlane.xlu0 %14 }
  0x93   :  { %v20_v7 = vmul.f32 0.03125, %v15_v6 }
  0x95   :  { %v22_v8 = vadd.f32 1.1920929e-07, %v20_v7 }
  0x96   :  { %v18_v9 = vpop.xlane.xlu0 %17 }
  0x97   :  { %47 = vrsqrt.f32 %v22_v8  ;;  %v21_v10 = vmul.f32 0.03125, %v18_v9 }
  0x99   :  { %v23_v11 = vadd.f32 1.1920929e-07, %v21_v10 }
  0x9b   :  { %49 = vrsqrt.f32 %v23_v11 }
  0xa1   :  { %v48_v12 = vpop.eup %47 }
  0xa2   :  { %v26_v13 = vmul.f32 %v48_v12, %v8_v0 }
  0xa4   :  { %v45_v14 = vpack.c.bf16 %v26_v13, %v26_v13 }
  0xa5   :  { %v50_v15 = vpop.eup %49 }
  0xa6   :  { %37 = vst.msk [vmem:[%s74_s1] sm:$0xf] %vm36_vm1, %v45_v14  ;;  %v27_v16 = vmul.f32 %v50_v15, %v9_v1 }
  0xa8   :  { %v46_v17 = vpack.c.bf16 %v27_v16, %v27_v16 }
  0xaa   :  { %38 = vst.msk [vmem:[%s74_s1 + $0x4] sm:$0xf] %vm36_vm1, %v46_v17 }

// kernel: gpt_forward.19
= control target key start
LH: loop header
LB: loop body
LE: loop exit
PB: predicated region body
PF: predicated region fallthrough
CT: control target
= control target key end

     0   :  { %vm16_vm0 = vcmask 785408   ;;  %v138_v0 = vmov 0.0   ;;  %vm139_vm1 = vmmov 0   ;;  %vm44_vm2 = vcmask 261120   ;;  %s174_s1 = inlined_call_operand.vmem [shape: bf16[32,96], index: 1, kind: input, shape index: {}]   ;;  %s175_s0 = inlined_call_operand.vmem [shape: bf16[16,32], index: 0, kind: input, shape index: {}]   ;;  %s176_s2 = inlined_call_operand.vmem [shape: bf16[16,96], index: 2, kind: output, shape index: {}]  }
   0x1   :  { %125 = vmatprep.subr.bf16.mxu0 %v138_v0  ;;  %v135_v1 = vld [vmem:[%s174_s1] sm:$0xff]   ;;  %129 = vmatprep.mubr.msk.bf16.mxu0 %vm139_vm1, %v138_v0  ;;  %17 = vst.msk [vmem:[#allocation2] sm:$0xff] %vm16_vm0, %v138_v0  ;;  %18 = vst.msk [vmem:[#allocation2 + $0x8] sm:$0xff] %vm16_vm0, %v138_v0  ;;  %v136_v2 = vld [vmem:[%s174_s1 + $0x8] sm:$0xff]   ;;  %vm107_vm3 = vcmask 781312  }
   0x2   :  { %126 = vmatpush3.bf16.msra.mxu0 %v135_v1  ;;  %v137_v3 = vld [vmem:[%s175_s0] sm:$0xff]  }
   0x3   :  { %127 = vmatprep.subr.bf16.mxu0 %v138_v0 }
   0x6   :  { %128 = vmatpush3.bf16.msra.mxu0 %v136_v2 }
   0x8   :  { %v19_v4 = vld [vmem:[#allocation2] sm:$0xff]  ;;  %v20_v6 = vld [vmem:[#allocation2 + $0x8] sm:$0xff] }
   0x9   :  { %130 = vmatmul.mubr.msk.bf16.vlgmr.msra.gmra.mrb[0].mxu0 %vm44_vm2, %v137_v3 }
  0xdc   :  { %v82_v5 = vpop.f32.mrb[0].mxu0 }
  0xdd   :  { %v89_v7 = vadd.f32 %v82_v5, %v19_v4  ;;  %v131_v8 = vpop.f32.mrb[1].mxu0 }
  0xde   :  { %v85_v9 = vpop.f32.mrb[2].mxu0 }
  0xdf   :  { %92 = vst.msk [vmem:[#allocation2] sm:$0xff] %vm16_vm0, %v89_v7  ;;  %v90_v10 = vadd.f32 %v85_v9, %v20_v6  ;;  %v132_v11 = vpop.f32.mrb[3].mxu0 }
  0xe1   :  { %93 = vst.msk [vmem:[#allocation2 + $0x8] sm:$0xff] %vm16_vm0, %v90_v10 }
  0xe6   :  { %v97_v12 = vld [vmem:[#allocation2] sm:$0xff] }
  0xe7   :  { %v120_v13 = vpack.c.bf16 %v97_v12, %v97_v12 }
  0xe8   :  { %v98_v14 = vld [vmem:[#allocation2 + $0x8] sm:$0xff] }
  0xe9   :  { %108 = vst.msk [vmem:[%s176_s2] sm:$0xf] %vm107_vm3, %v120_v13  ;;  %v121_v15 = vpack.c.bf16 %v98_v14, %v98_v14 }
  0xeb   :  { %109 = vst.msk [vmem:[%s176_s2 + $0x4] sm:$0xf] %vm107_vm3, %v121_v15 }

// kernel: gpt_forward.20
= control target key start
LH: loop header
LB: loop body
LE: loop exit
PB: predicated region body
PF: predicated region fallthrough
CT: control target
= control target key end

     0   :  { %s1051_s18 = smov 0   ;;  %s1053_s19 = smov 0   ;;  %s1252_s0 = inlined_call_operand.vmem [shape: bf16[2,8,96], index: 0, kind: input, shape index: {}]   ;;  %s1253_s1 = inlined_call_operand.vmem [shape: bf16[8,8], index: 1, kind: input, shape index: {}]   ;;  %s1254_s2 = inlined_call_operand.vmem [shape: bf16[8,8], index: 2, kind: input, shape index: {}]   ;;  %s1255_s3 = inlined_call_operand.vmem [shape: bf16[2,4,8,8], index: 3, kind: output, shape index: {0}]   ;;  %s1256_s4 = inlined_call_operand.vmem [shape: bf16[2,4,8,8], index: 4, kind: output, shape index: {1}]   ;;  %s1257_s5 = inlined_call_operand.vmem [shape: bf16[2,4,8,8], index: 5, kind: output, shape index: {2}]  }
   0x1   :  { %s1055_s20 = smov 0  }
   0x2 LB: > { %s28_s21 = sadd.s32 1, %s991_s19  ;;  %p873_p0 = scmp.ge.s32.totalorder %s995_s20, 1  ;;  %s995_s20 = sphi %s1055_s20, %s16_s20   ;;  %s991_s19 = sphi %s1053_s19, %s1259_s19   ;;  %s987_s18 = sphi %s1051_s18, %s1258_s18  }
   0x3   : > { %p30_p1 = scmp.ge.s32.totalorder %s28_s21, 2  ;;  %p232_p2 = scmp.lt.s32.totalorder %s995_s20, 3 }
   0x5   : > { %s1261_s21 = smov (%p30_p1, %s28_s21), 0  ;;  %p233_p3 = pnand %p873_p0, %p232_p2 }
   0x6   : > { %p289_p4 = scmp.lt.s32.totalorder (!%p233_p3), %s987_s18, 1  ;;  %s997_s26 = smov (!%p233_p3), 104   ;;  %vm335_vm0 = vcmask (!%p233_p3), 64512   ;;  %v328_v27 = vld [vmem:[%s1253_s1] sm:$0xf] (!%p233_p3)  ;;  %vm358_vm1 = vcmask (!%p233_p3), 60416  }
   0x7   : > { %236 = sbr.rel (%p233_p3) target bundleno = 695 (0x2b7), region = 32  ;;  %s998_s27 = smov (!%p233_p3), 120   ;;  %v1115_v28 = vunpack.c.l.bf16 (!%p233_p3), %v328_v27  ;;  %vm353_vm2 = vcmask (!%p233_p3), 31744  }
   0x8   : > { %s999_s28 = smov (!%p233_p3), 112   ;;  %s1000_s29 = smov (!%p233_p3), 96  }
   0x9   : > { %s1001_s30 = smov (!%p233_p3), 80   ;;  %s1002_s6 = smov (!%p233_p3), 88  }
   0xa   : > { %s1003_s7 = smov (!%p233_p3), 72   ;;  %s1004_s10 = smov (!%p233_p3), 32  }
   0xb   : > { %s1005_s11 = smov (!%p233_p3), 8   ;;  %s1006_s12 = smov (!%p233_p3), 64  }
   0xc   : > { %s1007_s13 = smov (!%p233_p3), 40   ;;  %s1008_s14 = smov (!%p233_p3), 56  }
   0xd   : > { %s1009_s15 = smov (!%p233_p3), 16   ;;  %s1011_s24 = smov (!%p233_p3), 124  }
   0xe   : > { %s1263_s18 = smov (!%p289_p4, %s987_s18), 1  ;;  %s1012_s8 = smov 100  }
   0xf   : > { %s874_s22 = sshll.u32 %s1263_s18, 2  ;;  %s1129_s16 = sshll.u32 %s1263_s18, 4 }
  0x10   : > { %s1075_s25 = scalar_lea.vmem %s1252_s0, %s874_s22  ;;  %s1136_s23 = scalar_lea.vmem %s1257_s5, %s1129_s16 }
  0x11   : > { %v576_v0 = vld [vmem:[%s1075_s25] sm:$0xf]  ;;  %s1010_s18 = smov 4   ;;  %s1013_s9 = smov 92  }
  0x12   : > { %v404_v1 = vld [vmem:[%s1075_s25] sm:$0xf]  ;;  %v1080_v3 = vunpack.c.l.bf16 %v576_v0  ;;  %s1015_s17 = smov 76   ;;  %s1016_s22 = smov 116  }
  0x13   : > { %v490_v2 = vld [vmem:[%s1075_s25] sm:$0xf]  ;;  %v1082_v4 = vunpack.c.l.bf16 %v404_v1 }
  0x14   : > { %v1084_v5 = vunpack.c.l.bf16 %v490_v2  ;;  %v332_v6 = vld [vmem:[%s1075_s25] sm:$0xf]  ;;  %v578_v8 = vmul.f32 %v1080_v3, %v1080_v3 }
  0x15   : > { %v1087_v7 = vunpack.c.l.bf16 %v332_v6  ;;  %v406_v9 = vmul.f32 %v1082_v4, %v1082_v4  ;;  %v398_v29 = vld [vmem:[%s1075_s25] sm:$0xf] }
  0x16   : > { %580 = vrot.lane.b32.xlu1 %v578_v8, %s997_s26  ;;  %v492_v10 = vmul.f32 %v1084_v5, %v1084_v5  ;;  %v483_v30 = vld [vmem:[%s1075_s25] sm:$0xf] }
  0x17   : > { %408 = vrot.lane.b32.xlu0 %v406_v9, %s998_s27  ;;  %v334_v11 = vmul.f32 %v1087_v7, %v1087_v7 }
  0x19   : > { %v336_v23 = vsel %vm335_vm0, %v334_v11, 0.0 }
  0x1a   : > { %361 = vrot.lane.b32.xlu1 %v334_v11, %s1000_s29 }
  0x1b   : > { %494 = vrot.lane.b32.xlu0 %v492_v10, %s999_s28 }
  0x1e   : > { %532 = vrot.lane.b32.xlu1 %v492_v10, %s1001_s30 }
  0x1f   : > { %446 = vrot.lane.b32.xlu0 %v406_v9, %s1002_s6 }
  0x23   : > { %618 = vrot.lane.b32.xlu0 %v578_v8, %s1003_s7 }
  0x88   : > { %v581_v12 = vpop.permute.xlu1 %580 }
  0x89   : > { %v409_v13 = vpop.permute.xlu0 %408  ;;  %v583_v21 = vsel %vm335_vm0, %v581_v12, 0.0 }
  0x8a   : > { %v411_v14 = vsel %vm335_vm0, %v409_v13, 0.0 }
  0x8b   : > { %412 = vadd.xlane.f32.xlu1 %v411_v14 }
  0x8c   : > { %v362_v16 = vpop.permute.xlu1 %361 }
  0x8d   : > { %v495_v15 = vpop.permute.xlu0 %494  ;;  %v364_v18 = vsel %vm335_vm0, %v362_v16, 0.0 }
  0x8e   : > { %v497_v17 = vsel %vm335_vm0, %v495_v15, 0.0 }
  0x8f   : > { %498 = vadd.xlane.f32.xlu0 %v497_v17  ;;  %365 = vadd.xlane.f32.xlu1 %v364_v18 }
  0x90   : > { %v533_v19 = vpop.permute.xlu1 %532 }
  0x91   : > { %v447_v20 = vpop.permute.xlu0 %446  ;;  %v535_v22 = vsel %vm335_vm0, %v533_v19, 0.0 }
  0x92   : > { %v449_v24 = vsel %vm335_vm0, %v447_v20, 0.0 }
  0x93   : > { %584 = vadd.xlane.f32.xlu0 %v583_v21  ;;  %536 = vadd.xlane.f32.xlu1 %v535_v22 }
  0x95   : > { %v619_v25 = vpop.permute.xlu0 %618 }
  0x96   : > { %v621_v26 = vsel %vm335_vm0, %v619_v25, 0.0 }
  0x97   : > { %337 = vadd.xlane.f32.xlu1 %v336_v23  ;;  %450 = vadd.xlane.f32.xlu0 %v449_v24 }
  0x9b   : > { %622 = vadd.xlane.f32.xlu0 %v621_v26 }
  0xa8   : > { %372 = vrot.lane.b32.xlu1 %v1115_v28, %s1004_s10 }
  0xac   : > { %419 = vrot.lane.b32.xlu1 %v1115_v28, %s1005_s11 }
  0xb0   : > { %485 = vrot.lane.b32.xlu1 %v483_v30, %s1008_s14 }
  0xb1   : > { %400 = vrot.lane.b32.xlu0 %v398_v29, %s1006_s12  ;;  %s1014_s12 = smov 84  }
  0xb5   : > { %456 = vrot.lane.b32.xlu0 %v1115_v28, %s1007_s13 }
  0xb9   : > { %505 = vrot.lane.b32.xlu0 %v1115_v28, %s1009_s15 }
 0x118   : > { %v413_v31 = vpop.xlane.xlu1 %412 }
 0x119   : > { %v414_v32 = vmul.f32 0.125, %v413_v31 }
 0x11b   : > { %v415_v33 = vadd.f32 1.1920929e-07, %v414_v32 }
 0x11c   : > { %v499_v34 = vpop.xlane.xlu0 %498  ;;  %v366_v35 = vpop.xlane.xlu1 %365 }
 0x11d   : > { %957 = vrsqrt.f32 %v415_v33  ;;  %v367_v36 = vmul.f32 0.125, %v366_v35  ;;  %v500_v59 = vmul.f32 0.125, %v499_v34 }
 0x11f   : > { %v368_v37 = vadd.f32 1.1920929e-07, %v367_v36  ;;  %v501_v0 = vadd.f32 1.1920929e-07, %v500_v59 }
 0x120   : > { %v585_v38 = vpop.xlane.xlu0 %584  ;;  %v537_v39 = vpop.xlane.xlu1 %536 }
 0x121   : > { %959 = vrsqrt.f32 %v368_v37  ;;  %v538_v54 = vmul.f32 0.125, %v537_v39  ;;  %v586_v1 = vmul.f32 0.125, %v585_v38 }
 0x123   : > { %v539_v60 = vadd.f32 1.1920929e-07, %v538_v54  ;;  %v587_v10 = vadd.f32 1.1920929e-07, %v586_v1 }
 0x124   : > { %v338_v40 = vpop.xlane.xlu1 %337  ;;  %v451_v41 = vpop.xlane.xlu0 %450 }
 0x125   : > { %v340_v42 = vmul.f32 0.125, %v338_v40  ;;  %v452_v43 = vmul.f32 0.125, %v451_v41 }
 0x127   : > { %v958_v44 = vpop.eup %957  ;;  %v341_v45 = vadd.f32 1.1920929e-07, %v340_v42  ;;  %v453_v46 = vadd.f32 1.1920929e-07, %v452_v43 }
 0x128   : > { %v417_v47 = vmul.f32 0.35355338, %v958_v44  ;;  %v373_v48 = vpop.permute.xlu1 %372  ;;  %v623_v49 = vpop.xlane.xlu0 %622 }
 0x129   : > { %961 = vrsqrt.f32 %v341_v45  ;;  %v624_v11 = vmul.f32 0.125, %v623_v49 }
 0x12a   : > { %963 = vrsqrt.f32 %v453_v46  ;;  %v418_v50 = vmul.f32 %v417_v47, %v1082_v4 }
 0x12b   : > { %v960_v51 = vpop.eup %959  ;;  %965 = vrsqrt.f32 %v539_v60  ;;  %v625_v13 = vadd.f32 1.1920929e-07, %v624_v11 }
 0x12c   : > { %v420_v52 = vpop.permute.xlu1 %419  ;;  %v401_v53 = vpop.permute.xlu0 %400  ;;  %v370_v55 = vmul.f32 %v960_v51, %v1087_v7  ;;  %967 = vrsqrt.f32 %v501_v0 }
 0x12d   : > { %v1139_v56 = vmul.f32 %v420_v52, %v418_v50  ;;  %403 = vst.msk [vmem:[%s1136_s23] sm:$0xf] %vm358_vm1, %v401_v53  ;;  %969 = vrsqrt.f32 %v587_v10 }
 0x12e   : > { %v1143_v57 = vmul.f32 %v373_v48, %v370_v55  ;;  %971 = vrsqrt.f32 %v625_v13 }
 0x130   : > { %v486_v58 = vpop.permute.xlu1 %485  ;;  %v457_v6 = vpop.permute.xlu0 %456 }
 0x131   : > { %886 = vst.msk [vmem:[%s1136_s23 + $0x4] sm:$0xf] %vm358_vm1, %v486_v58 }
 0x133   : > { %v962_v61 = vpop.eup %961 }
 0x134   : > { %v964_v62 = vpop.eup %963  ;;  %v343_v63 = vmul.f32 0.35355338, %v962_v61  ;;  %v1180_v21 = vpop.permute.xlu0 %505 }
 0x135   : > { %v455_v2 = vmul.f32 %v964_v62, %v1082_v4  ;;  %v966_v12 = vpop.eup %965 }
 0x136   : > { %v344_v8 = vmul.f32 %v343_v63, %v1087_v7  ;;  %v1152_v4 = vmul.f32 %v966_v12, %v1084_v5  ;;  %v968_v7 = vpop.eup %967 }
 0x137   : > { %v1149_v9 = vmul.f32 %v457_v6, %v455_v2  ;;  %v503_v14 = vmul.f32 0.35355338, %v968_v7  ;;  %v970_v15 = vpop.eup %969 }
 0x138   : > { %350 = vrot.lane.b32.xlu1 %v344_v8, %s1010_s18  ;;  %347 = vrot.lane.b32.xlu0 %v344_v8, %s1011_s24  ;;  %v589_v16 = vmul.f32 0.35355338, %v970_v15  ;;  %s1017_s18 = smov 108   ;;  %v972_v18 = vpop.eup %971  ;;  %v345_v26 = vmul.f32 %v344_v8, %v1115_v28 }
 0x139   : > { %v1157_v17 = vmul.f32 %v503_v14, %v1084_v5  ;;  %v1167_v20 = vmul.f32 %v972_v18, %v1080_v3  ;;  %v569_v5 = vld [vmem:[%s1075_s25] sm:$0xf] }
 0x13a   : > { %v1162_v19 = vmul.f32 %v589_v16, %v1080_v3  ;;  %v330_v3 = vld [vmem:[%s1254_s2] sm:$0xf] }
 0x13b   : > { %v331_v22 = vunpack.c.l.bf16 %v330_v3 }
 0x13c   : > { %380 = vrot.lane.b32.xlu1 %v370_v55, %s1012_s8  ;;  %377 = vrot.lane.b32.xlu0 %v370_v55, %s1013_s9 }
 0x140   : > { %461 = vrot.lane.b32.xlu1 %v455_v2, %s1014_s12  ;;  %464 = vrot.lane.b32.xlu0 %v455_v2, %s1013_s9  ;;  %s1019_s9 = smov 48  }
 0x144   : > { %547 = vrot.lane.b32.xlu1 %v1152_v4, %s1015_s17  ;;  %550 = vrot.lane.b32.xlu0 %v1152_v4, %s1014_s12  ;;  %s1020_s12 = smov 24  }
 0x148   : > { %427 = vrot.lane.b32.xlu1 %v418_v50, %s1011_s24  ;;  %424 = vrot.lane.b32.xlu0 %v418_v50, %s1016_s22  ;;  %s1018_s24 = smov 68  }
 0x14c   : > { %510 = vrot.lane.b32.xlu1 %v1157_v17, %s1017_s18  ;;  %513 = vrot.lane.b32.xlu0 %v1157_v17, %s1016_s22 }
 0x150   : > { %596 = vrot.lane.b32.xlu1 %v1162_v19, %s1012_s8  ;;  %599 = vrot.lane.b32.xlu0 %v1162_v19, %s1017_s18 }
 0x154   : > { %633 = vrot.lane.b32.xlu1 %v1167_v20, %s1018_s24  ;;  %636 = vrot.lane.b32.xlu0 %v1167_v20, %s1015_s17  ;;  %s1189_s24 = scalar_lea.vmem %s1255_s3, %s1129_s16 }
 0x158   : > { %542 = vrot.lane.b32.xlu1 %v1115_v28, %s1019_s9  ;;  %571 = vrot.lane.b32.xlu0 %v569_v5, %s1019_s9 }
 0x15c   : > { %591 = vrot.lane.b32.xlu1 %v1115_v28, %s1020_s12 }
 0x1aa   : > { %v348_v23 = vpop.permute.xlu0 %347  ;;  %v351_v24 = vpop.permute.xlu1 %350 }
 0x1ab   : > { %v354_v25 = vsel %vm353_vm2, %v348_v23, %v351_v24 }
 0x1ac   : > { %v355_v27 = vmul.f32 %v354_v25, %v331_v22 }
 0x1ae   : > { %v356_v29 = vadd.f32 %v355_v27, %v345_v26  ;;  %v378_v30 = vpop.permute.xlu0 %377  ;;  %v381_v31 = vpop.permute.xlu1 %380 }
 0x1af   : > { %v383_v32 = vsel %vm353_vm2, %v378_v30, %v381_v31 }
 0x1b0   : > { %v357_v33 = vpack.c.bf16 %v356_v29, %v356_v29  ;;  %v384_v34 = vmul.f32 %v383_v32, %v331_v22 }
 0x1b2   : > { %v465_v35 = vpop.permute.xlu0 %464  ;;  %386 = vrot.lane.b32.xlu0 %v384_v34, %s1004_s10  ;;  %v462_v36 = vpop.permute.xlu1 %461  ;;  %359 = vst.msk [vmem:[%s1189_s24] sm:$0xf] %vm358_vm1, %v357_v33 }
 0x1b3   : > { %v467_v37 = vsel %vm353_vm2, %v462_v36, %v465_v35 }
 0x1b4   : > { %v468_v38 = vmul.f32 %v467_v37, %v331_v22 }
 0x1b6   : > { %v551_v39 = vpop.permute.xlu0 %550  ;;  %470 = vrot.lane.b32.xlu1 %v468_v38, %s1007_s13  ;;  %v548_v40 = vpop.permute.xlu1 %547 }
 0x1b7   : > { %v553_v41 = vsel %vm353_vm2, %v548_v40, %v551_v39 }
 0x1b8   : > { %v554_v42 = vmul.f32 %v553_v41, %v331_v22 }
 0x1ba   : > { %v425_v43 = vpop.permute.xlu0 %424  ;;  %556 = vrot.lane.b32.xlu0 %v554_v42, %s1019_s9  ;;  %v428_v44 = vpop.permute.xlu1 %427 }
 0x1bb   : > { %v430_v45 = vsel %vm353_vm2, %v425_v43, %v428_v44 }
 0x1bc   : > { %v431_v46 = vmul.f32 %v430_v45, %v331_v22 }
 0x1be   : > { %v514_v47 = vpop.permute.xlu0 %513  ;;  %433 = vrot.lane.b32.xlu0 %v431_v46, %s1005_s11  ;;  %v511_v48 = vpop.permute.xlu1 %510 }
 0x1bf   : > { %v516_v49 = vsel %vm353_vm2, %v511_v48, %v514_v47 }
 0x1c0   : > { %v517_v50 = vmul.f32 %v516_v49, %v331_v22 }
 0x1c2   : > { %v600_v51 = vpop.permute.xlu0 %599  ;;  %519 = vrot.lane.b32.xlu1 %v517_v50, %s1009_s15  ;;  %v597_v52 = vpop.permute.xlu1 %596 }
 0x1c3   : > { %v602_v53 = vsel %vm353_vm2, %v597_v52, %v600_v51 }
 0x1c4   : > { %v603_v54 = vmul.f32 %v602_v53, %v331_v22 }
 0x1c6   : > { %605 = vrot.lane.b32.xlu0 %v603_v54, %s1020_s12  ;;  %v634_v55 = vpop.permute.xlu1 %633  ;;  %v637_v58 = vpop.permute.xlu0 %636 }
 0x1c7   : > { %v639_v59 = vsel %vm353_vm2, %v634_v55, %v637_v58 }
 0x1c8   : > { %v640_v60 = vmul.f32 %v639_v59, %v331_v22 }
 0x1ca   : > { %628 = vrot.lane.b32.xlu0 %v1115_v28, %s1008_s14  ;;  %642 = vrot.lane.b32.xlu1 %v640_v60, %s1008_s14  ;;  %v572_v61 = vpop.permute.xlu0 %571  ;;  %v543_v62 = vpop.permute.xlu1 %542 }
 0x1cb   : > { %891 = vst.msk [vmem:[%s1136_s23 + $0x8] sm:$0xf] %vm358_vm1, %v572_v61  ;;  %v545_v10 = vmul.f32 %v543_v62, %v1152_v4 }
 0x1ce   : > { %v592_v63 = vpop.permute.xlu1 %591 }
 0x1cf   : > { %v594_v4 = vmul.f32 %v592_v63, %v1162_v19 }
 0x224   : > { %v387_v0 = vpop.permute.xlu0 %386 }
 0x225   : > { %v389_v1 = vadd.f32 %v387_v0, %v1143_v57  ;;  %v508_v57 = vmul.f32 %v1180_v21, %v1157_v17  ;;  %v655_v17 = vld [vmem:[%s1075_s25] sm:$0xf] }
 0x227   : > { %v902_v2 = vpack.c.bf16 %v389_v1, %v389_v1 }
 0x228   : > { %v471_v6 = vpop.permute.xlu1 %470 }
 0x229   : > { %v473_v8 = vadd.f32 %v471_v6, %v1149_v9  ;;  %394 = vrot.lane.b32.xlu1 %v902_v2, %s1000_s29  ;;  %s319_s29 = scalar_lea.vmem %s1256_s4, %s1129_s16 }
 0x22b   : > { %v904_v11 = vpack.c.bf16 %v473_v8, %v473_v8 }
 0x22c   : > { %v557_v28 = vpop.permute.xlu0 %556 }
 0x22d   : > { %v559_v12 = vadd.f32 %v557_v28, %v545_v10  ;;  %478 = vrot.lane.b32.xlu0 %v904_v11, %s1002_s6 }
 0x22f   : > { %v906_v13 = vpack.c.bf16 %v559_v12, %v559_v12 }
 0x230   : > { %v434_v7 = vpop.permute.xlu0 %433 }
 0x231   : > { %v436_v14 = vadd.f32 %v434_v7, %v1139_v56  ;;  %564 = vrot.lane.b32.xlu1 %v906_v13, %s1001_s30 }
 0x233   : > { %v903_v9 = vpack.c.bf16 %v436_v14, %v436_v14 }
 0x234   : > { %v520_v15 = vpop.permute.xlu1 %519 }
 0x235   : > { %v522_v16 = vadd.f32 %v520_v15, %v508_v57  ;;  %441 = vrot.lane.b32.xlu1 %v903_v9, %s998_s27 }
 0x237   : > { %v905_v18 = vpack.c.bf16 %v522_v16, %v522_v16 }
 0x238   : > { %v606_v5 = vpop.permute.xlu0 %605 }
 0x239   : > { %v608_v3 = vadd.f32 %v606_v5, %v594_v4  ;;  %527 = vrot.lane.b32.xlu0 %v905_v18, %s999_s28 }
 0x23b   : > { %v907_v56 = vpack.c.bf16 %v608_v3, %v608_v3 }
 0x23c   : > { %v629_v22 = vpop.permute.xlu0 %628  ;;  %v643_v23 = vpop.permute.xlu1 %642 }
 0x23d   : > { %v631_v24 = vmul.f32 %v629_v22, %v1167_v20  ;;  %613 = vrot.lane.b32.xlu1 %v907_v56, %s997_s26 }
 0x23f   : > { %v645_v21 = vadd.f32 %v643_v23, %v631_v24 }
 0x241   : > { %v908_v25 = vpack.c.bf16 %v645_v21, %v645_v21  ;;  %657 = vrot.lane.b32.xlu1 %v655_v17, %s1007_s13 }
 0x243   : > { %650 = vrot.lane.b32.xlu0 %v908_v25, %s1003_s7 }
 0x29b   : > { %v395_v19 = vpop.permute.xlu1 %394 }
 0x29c   : > { %397 = vst.msk [vmem:[%s319_s29] sm:$0xf] %vm358_vm1, %v395_v19 }
 0x29f   : > { %v479_v20 = vpop.permute.xlu0 %478 }
 0x2a0   : > { %885 = vst.msk [vmem:[%s319_s29 + $0x4] sm:$0xf] %vm358_vm1, %v479_v20 }
 0x2a3   : > { %v565_v26 = vpop.permute.xlu1 %564 }
 0x2a4   : > { %890 = vst.msk [vmem:[%s319_s29 + $0x8] sm:$0xf] %vm358_vm1, %v565_v26 }
 0x2a7   : > { %v442_v27 = vpop.permute.xlu1 %441 }
 0x2a8   : > { %883 = vst.msk [vmem:[%s1189_s24 + $0x4] sm:$0xf] %vm358_vm1, %v442_v27 }
 0x2ab   : > { %v528_v29 = vpop.permute.xlu0 %527 }
 0x2ac   : > { %888 = vst.msk [vmem:[%s1189_s24 + $0x8] sm:$0xf] %vm358_vm1, %v528_v29 }
 0x2af   : > { %v614_v30 = vpop.permute.xlu1 %613 }
 0x2b0   : > { %893 = vst.msk [vmem:[%s1189_s24 + $0xc] sm:$0xf] %vm358_vm1, %v614_v30 }
 0x2b3   : > { %v658_v31 = vpop.permute.xlu1 %657 }
 0x2b4   : > { %896 = vst.msk [vmem:[%s1136_s23 + $0xc] sm:$0xf] %vm358_vm1, %v658_v31 }
 0x2b5   : > { %v651_v32 = vpop.permute.xlu0 %650 }
 0x2b6   : > { %895 = vst.msk [vmem:[%s319_s29 + $0xc] sm:$0xf] %vm358_vm1, %v651_v32 }
 0x2b7 PF: > { %s16_s20 = sadd.s32 1, %s995_s20   ;;  %s1258_s18 = smov %s991_s19 }
 0x2b8   : > { %p13_p5 = scmp.ge.s32.totalorder %s16_s20, 4   ;;  %s1259_s19 = smov %s1261_s21 }
 0x2ba   :  { %15 = sbr.rel (!%p13_p5) target bundleno = 2 (0x2), region = 101 }

// kernel: gpt_forward.21
= control target key start
LH: loop header
LB: loop body
LE: loop exit
PB: predicated region body
PF: predicated region fallthrough
CT: control target
= control target key end

     0   :  { %s1253_s22 = smov 0   ;;  %s1255_s23 = smov 0   ;;  %s1434_s0 = inlined_call_operand.<no memory space> [shape: s32[1], index: 0, kind: input, shape index: {}, may-alias: {0,1}]   ;;  %s1435_s1 = inlined_call_operand.<no memory space> [shape: s32[1], index: 1, kind: input, shape index: {}, may-alias: {0,1}]   ;;  %s1436_s2 = inlined_call_operand.vmem [shape: bf16[2,4,8,8], index: 2, kind: input, shape index: {}]   ;;  %s1437_s3 = inlined_call_operand.vmem [shape: bf16[2,4,8,8], index: 3, kind: input, shape index: {}]   ;;  %s1438_s4 = inlined_call_operand.vmem [shape: bf16[2,4,8,8], index: 4, kind: input, shape index: {}]   ;;  %s1439_s5 = inlined_call_operand.vmem [shape: bf16[2,8,32], index: 5, kind: output, shape index: {}]  }
   0x1   :  { %10 = sst [smem:[#allocation6]] %s1434_s0  ;;  %s1257_s24 = smov 0  }
   0x2   :  { %11 = sst [smem:[#allocation7]] %s1435_s1 }
   0x3 LB: > { %s29_s0 = sadd.s32 1, %s1202_s23  ;;  %p1033_p0 = scmp.ge.s32.totalorder %s1206_s24, 1  ;;  %s1206_s24 = sphi %s1257_s24, %s17_s24   ;;  %s1202_s23 = sphi %s1255_s23, %s1441_s23   ;;  %s1198_s22 = sphi %s1253_s22, %s1440_s22  }
   0x4   : > { %p31_p1 = scmp.ge.s32.totalorder %s29_s0, 2  ;;  %p204_p2 = scmp.lt.s32.totalorder %s1206_s24, 3 }
   0x6   : > { %s1443_s0 = smov (%p31_p1, %s29_s0), 0  ;;  %p205_p3 = pnand %p1033_p0, %p204_p2 }
   0x7   : > { %s1271_s1 = sld [smem:[#allocation6]] (!%p205_p3)  ;;  %p254_p4 = scmp.lt.s32.totalorder (!%p205_p3), %s1198_s22, 1 }
   0x8   : > { %208 = sbr.rel (%p205_p3) target bundleno = 1012 (0x3f4), region = 32  ;;  %s1273_s25 = sld [smem:[#allocation7]] (!%p205_p3) }
   0xd   : > { %p256_p5 = scmp.lt.s32.totalorder (!%p205_p3), %s1271_s1, 0 }
   0xe   : > { %p266_p6 = scmp.lt.s32.totalorder (!%p205_p3), %s1273_s25, 0  ;;  %p1041_p7 = scmp.ne.s32.totalorder (!%p205_p3), %s1273_s25, 0 }
   0xf   : > { %s1445_s22 = smov (!%p254_p4, %s1198_s22), 1  ;;  %vm299_vm0 = vcmask (!%p1041_p7), 7168   ;;  %vm308_vm1 = vcmask (!%p1041_p7), 64512   ;;  %v1208_v0 = vmov (!%p1041_p7), -inf   ;;  %v1209_v1 = vmov (!%p1041_p7), 0.0  }
  0x10   : > { %s1034_s26 = sshll.u32 %s1445_s22, 2  ;;  %300 = vst.msk [vmem:[#allocation2] sm:$0xff] (!%p1041_p7), %vm299_vm0, %v1208_v0  ;;  %301 = vst.msk [vmem:[#allocation2 + $0x8] sm:$0xff] (!%p1041_p7), %vm299_vm0, %v1208_v0 }
  0x11   : > { %s257_s27 = scalar_select %p256_p5, %s1271_s1, 0 }
  0x12   : > { %s267_s28 = scalar_select %p266_p6, %s1273_s25, 0 }
  0x13   : > { %s259_s29 = sadd.s32 %s1034_s26, %s257_s27  ;;  %s288_s30 = sadd.s32 %s257_s27, %s1445_s22  ;;  %302 = vst.msk [vmem:[#allocation2 + $0x10] sm:$0xff] (!%p1041_p7), %vm299_vm0, %v1208_v0  ;;  %303 = vst.msk [vmem:[#allocation2 + $0x18] sm:$0xff] (!%p1041_p7), %vm299_vm0, %v1208_v0 }
  0x14   : > { %s1035_s6 = sshll.u32 %s259_s29, 2  ;;  %s269_s7 = sadd.s32 %s1034_s26, %s267_s28  ;;  %304 = vst.msk [vmem:[#allocation3] sm:$0xff] (!%p1041_p7), %vm299_vm0, %v1209_v1  ;;  %305 = vst.msk [vmem:[#allocation3 + $0x8] sm:$0xff] (!%p1041_p7), %vm299_vm0, %v1209_v1 }
  0x15   : > { %s1282_s10 = scalar_lea.vmem %s1436_s2, %s1035_s6  ;;  %s1037_s11 = sshll.u32 %s269_s7, 2  ;;  %306 = vst.msk [vmem:[#allocation3 + $0x10] sm:$0xff] (!%p1041_p7), %vm299_vm0, %v1209_v1  ;;  %307 = vst.msk [vmem:[#allocation3 + $0x18] sm:$0xff] (!%p1041_p7), %vm299_vm0, %v1209_v1 }
  0x16   : > { %s1287_s14 = scalar_lea.vmem %s1437_s3, %s1037_s11  ;;  %s1292_s17 = scalar_lea.vmem %s1438_s4, %s1037_s11  ;;  %309 = vst.msk [vmem:[#allocation4] sm:$0xff] (!%p1041_p7), %vm308_vm1, %v1209_v1  ;;  %310 = vst.msk [vmem:[#allocation4 + $0x8] sm:$0xff] (!%p1041_p7), %vm308_vm1, %v1209_v1 }
  0x17   : > { %s1040_s18 = sshll.u32 %s288_s30, 2  ;;  %298 = sbr.rel (%p1041_p7) target bundleno = 30 (0x1e), region = 36  ;;  %311 = vst.msk [vmem:[#allocation4 + $0x10] sm:$0xff] (!%p1041_p7), %vm308_vm1, %v1209_v1  ;;  %312 = vst.msk [vmem:[#allocation4 + $0x18] sm:$0xff] (!%p1041_p7), %vm308_vm1, %v1209_v1 }
  0x18   : > { %s1297_s21 = scalar_lea.vmem %s1439_s5, %s1040_s18 }
  0x1e PF: > { %v317_v2 = vld [vmem:[%s1287_s14] sm:$0xf]  ;;  %vm336_vm2 = vcmask 64512   ;;  %v318_v3 = vld [vmem:[%s1287_s14 + $0x4] sm:$0xf]  ;;  %v1210_v4 = vmov 0.0   ;;  %p329_p8 = scmp.eq.s32.totalorder %s1273_s25, %s1271_s1  ;;  %v325_v15 = vlaneseq  ;;  %p1050_p9 = scmp.ne.s32.totalorder %s1273_s25, %s1271_s1 }
  0x1f   : > { %1075 = vmatprep.subr.bf16.mxu0 %v1210_v4  ;;  %v341_v5 = vsel %vm336_vm2, %v317_v2, 0  ;;  %1081 = vmatprep.subr.bf16.mxu1 %v1210_v4  ;;  %v387_v6 = vsel %vm336_vm2, %v318_v3, 0  ;;  %vm1211_vm3 = vmmov 0   ;;  %v319_v7 = vld [vmem:[%s1287_s14 + $0x8] sm:$0xf]  ;;  %v1212_v44 = vmov 0  }
  0x20   : > { %1076 = vmatpush3.bf16.xpose.msra.mxu0 %v341_v5  ;;  %1082 = vmatpush3.bf16.xpose.msra.mxu1 %v387_v6  ;;  %v320_v8 = vld [vmem:[%s1287_s14 + $0xc] sm:$0xf]  ;;  %v313_v9 = vld [vmem:[%s1282_s10] sm:$0xf]  ;;  %v314_v10 = vld [vmem:[%s1282_s10 + $0x4] sm:$0xf] }
  0x21   : > { %1077 = vmatprep.mubr.msk.bf16.mxu0 %vm1211_vm3, %v1210_v4  ;;  %1087 = vmatprep.subr.bf16.mxu0 %v1210_v4  ;;  %v433_v11 = vsel %vm336_vm2, %v319_v7, 0  ;;  %v479_v12 = vsel %vm336_vm2, %v320_v8, 0  ;;  %v315_v13 = vld [vmem:[%s1282_s10 + $0x8] sm:$0xf]  ;;  %v316_v14 = vld [vmem:[%s1282_s10 + $0xc] sm:$0xf] }
  0x22   : > { %1083 = vmatprep.mubr.msk.bf16.mxu1 %vm1211_vm3, %v1210_v4  ;;  %1093 = vmatprep.subr.bf16.mxu1 %v1210_v4  ;;  %s331_s22 = scalar_select %p329_p8, 1, 0  ;;  %v326_v16 = vshrl.u32 %v325_v15, 7  ;;  %v328_v17 = vand.u32 127, %v325_v15  ;;  %v521_v45 = vld [vmem:[#allocation2] sm:$0xff]  ;;  %vm609_vm7 = vcmask 7168  }
  0x23   : > { %1156 = vset.pattern.permute.xlu0 %v1212_v44  ;;  %1157 = vset.pattern.permute.xlu1 %v1212_v44  ;;  %v1353_v48 = vld [vmem:[#allocation2 + $0x8] sm:$0xff]  ;;  %v523_v53 = vld [vmem:[#allocation2 + $0x10] sm:$0xff]  ;;  %v1364_v57 = vld [vmem:[#allocation2 + $0x18] sm:$0xff]  ;;  %vm649_vm8 = vcmask 1043456   ;;  %s1214_s1 = smov (!%p1050_p9), 8   ;;  %vm886_vm9 = vcmask (!%p1050_p9), 60416  }
  0x24   : > { %v332_v18 = vstv %s331_s22  ;;  %vm330_vm4 = vcmp.gt.s32.totalorder %v328_v17, %v326_v16  ;;  %v321_v62 = vld [vmem:[%s1292_s17] sm:$0xf]  ;;  %v322_v1 = vld [vmem:[%s1292_s17 + $0x4] sm:$0xf]  ;;  %v323_v15 = vld [vmem:[%s1292_s17 + $0x8] sm:$0xf] }
  0x25   : > { %vm333_vm5 = vcmp.eq.s32.totalorder %v332_v18, 1  ;;  %v651_v63 = vsel %vm649_vm8, %v321_v62, 0  ;;  %v697_v2 = vsel %vm649_vm8, %v322_v1, 0  ;;  %v616_v1 = vld [vmem:[#allocation4 + $0x10] sm:$0xff]  ;;  %s1215_s25 = smov (!%p1050_p9), 16   ;;  %s1216_s26 = smov (!%p1050_p9), 24  }
  0x26   : > { %vm334_vm6 = vmand %vm333_vm5, %vm330_vm4  ;;  %vm894_vm10 = vcmask (!%p1050_p9), 126016   ;;  %vm902_vm11 = vcmask (!%p1050_p9), 191616   ;;  %vm910_vm12 = vcmask (!%p1050_p9), 257216  }
  0x27   : > { %1078 = vmatmul.mubr.msk.bf16.vlgmr.msra.gmra.mrb[0].mxu0 %vm336_vm2, %v313_v9  ;;  %1084 = vmatmul.mubr.msk.bf16.vlgmr.msra.gmra.mrb[0].mxu1 %vm336_vm2, %v314_v10  ;;  %v335_v19 = vsel %vm334_vm6, -inf, %v1210_v4 }
  0x28   : > { %1088 = vmatpush3.bf16.xpose.msra.mxu0 %v433_v11  ;;  %1094 = vmatpush3.bf16.xpose.msra.mxu1 %v479_v12 }
  0x29   : > { %1089 = vmatprep.mubr.msk.bf16.mxu0 %vm1211_vm3, %v1210_v4  ;;  %1095 = vmatprep.mubr.msk.bf16.mxu1 %vm1211_vm3, %v1210_v4 }
  0x2a   : > { %1099 = vmatprep.subr.bf16.mxu0 %v1210_v4  ;;  %1105 = vmatprep.subr.bf16.mxu1 %v1210_v4 }
  0x2f   : > { %1090 = vmatmul.mubr.msk.bf16.vlgmr.msra.gmra.mrb[4].mxu0 %vm336_vm2, %v315_v13  ;;  %1096 = vmatmul.mubr.msk.bf16.vlgmr.msra.gmra.mrb[4].mxu1 %vm336_vm2, %v316_v14 }
  0x30   : > { %1101 = vmatprep.mubr.msk.bf16.mxu0 %vm1211_vm3, %v1210_v4  ;;  %1107 = vmatprep.mubr.msk.bf16.mxu1 %vm1211_vm3, %v1210_v4 }
  0x31   : > { %1100 = vmatpush3.bf16.msra.mxu0 %v651_v63  ;;  %1106 = vmatpush3.bf16.msra.mxu1 %v697_v2 }
  0x32   : > { %1111 = vmatprep.subr.bf16.mxu0 %v1210_v4  ;;  %1117 = vmatprep.subr.bf16.mxu1 %v1210_v4 }
  0xfa   : > { %v377_v20 = vpop.f32.mrb[0].mxu0  ;;  %v423_v21 = vpop.f32.mrb[0].mxu1 }
  0xfb   : > { %v1337_v22 = vadd.f32 %v377_v20, %v335_v19  ;;  %v1079_v23 = vpop.f32.mrb[1].mxu0  ;;  %v1339_v24 = vadd.f32 %v423_v21, %v335_v19  ;;  %v1085_v25 = vpop.f32.mrb[1].mxu1  ;;  %v743_v20 = vsel %vm649_vm8, %v323_v15, 0  ;;  %v324_v21 = vld [vmem:[%s1292_s17 + $0xc] sm:$0xf] }
  0xfc   : > { %v380_v26 = vpop.f32.mrb[2].mxu0  ;;  %v426_v27 = vpop.f32.mrb[2].mxu1 }
  0xfd   : > { %v1080_v28 = vpop.f32.mrb[3].mxu0  ;;  %v525_v29 = vsel %vm336_vm2, %v1337_v22, -inf  ;;  %v1086_v30 = vpop.f32.mrb[3].mxu1  ;;  %v528_v31 = vsel %vm336_vm2, %v1339_v24, -inf  ;;  %v789_v26 = vsel %vm649_vm8, %v324_v21, 0 }
  0xfe   : > { %526 = vmax.xlane.f32.xlu0 %v525_v29 }
 0x102   : > { %529 = vmax.xlane.f32.xlu0 %v528_v31  ;;  %v469_v32 = vpop.f32.mrb[4].mxu0  ;;  %v515_v33 = vpop.f32.mrb[4].mxu1 }
 0x103   : > { %v1345_v34 = vadd.f32 %v469_v32, %v335_v19  ;;  %v1091_v35 = vpop.f32.mrb[5].mxu0  ;;  %v1347_v36 = vadd.f32 %v515_v33, %v335_v19  ;;  %v1097_v37 = vpop.f32.mrb[5].mxu1 }
 0x104   : > { %v472_v38 = vpop.f32.mrb[6].mxu0  ;;  %v518_v39 = vpop.f32.mrb[6].mxu1 }
 0x105   : > { %v1092_v40 = vpop.f32.mrb[7].mxu0  ;;  %v531_v41 = vsel %vm336_vm2, %v1345_v34, -inf  ;;  %v1098_v42 = vpop.f32.mrb[7].mxu1  ;;  %v534_v43 = vsel %vm336_vm2, %v1347_v36, -inf  ;;  %v585_v38 = vld [vmem:[#allocation3] sm:$0xff] }
 0x106   : > { %532 = vmax.xlane.f32.xlu1 %v531_v41  ;;  %v586_v41 = vld [vmem:[#allocation3 + $0x8] sm:$0xff] }
 0x10a   : > { %535 = vmax.xlane.f32.xlu1 %v534_v43 }
 0x18b   : > { %v527_v46 = vpop.xlane.xlu0 %526 }
 0x18c   : > { %v537_v47 = vmax.f32 %v521_v45, %v527_v46 }
 0x18e   : > { %v541_v49 = vsub.f32 %v521_v45, %v537_v47  ;;  %839 = vst.msk [vmem:[#allocation2] sm:$0xff] %vm609_vm7, %v537_v47  ;;  %555 = vperm.xlu0 %1156, %v537_v47   ;;  %v587_v47 = vld [vmem:[#allocation3 + $0x10] sm:$0xff] }
 0x18f   : > { %v530_v50 = vpop.xlane.xlu0 %529 }
 0x190   : > { %v545_v51 = vmul.f32 1.442695, %v541_v49  ;;  %v1357_v52 = vmax.f32 %v1353_v48, %v530_v50  ;;  %v588_v50 = vld [vmem:[#allocation3 + $0x18] sm:$0xff] }
 0x192   : > { %1158 = vpow2.f32 %v545_v51  ;;  %v542_v54 = vsub.f32 %v1353_v48, %v1357_v52  ;;  %840 = vst.msk [vmem:[#allocation2 + $0x8] sm:$0xff] %vm609_vm7, %v1357_v52  ;;  %560 = vperm.xlu1 %1157, %v1357_v52  }
 0x193   : > { %v533_v55 = vpop.xlane.xlu1 %532 }
 0x194   : > { %v539_v56 = vmax.f32 %v523_v53, %v533_v55  ;;  %v547_v30 = vmul.f32 1.442695, %v542_v54  ;;  %v614_v55 = vld [vmem:[#allocation4] sm:$0xff] }
 0x196   : > { %v543_v58 = vsub.f32 %v523_v53, %v539_v56  ;;  %841 = vst.msk [vmem:[#allocation2 + $0x10] sm:$0xff] %vm609_vm7, %v539_v56  ;;  %565 = vperm.xlu1 %1157, %v539_v56  }
 0x197   : > { %v536_v59 = vpop.xlane.xlu1 %535 }
 0x198   : > { %v1368_v60 = vmax.f32 %v1364_v57, %v536_v59  ;;  %v549_v23 = vmul.f32 1.442695, %v543_v58 }
 0x19a   : > { %v544_v61 = vsub.f32 %v1364_v57, %v1368_v60  ;;  %842 = vst.msk [vmem:[#allocation2 + $0x18] sm:$0xff] %vm609_vm7, %v1368_v60  ;;  %570 = vperm.xlu1 %1157, %v1368_v60   ;;  %v615_v57 = vld [vmem:[#allocation4 + $0x8] sm:$0xff] }
 0x19c   : > { %v1377_v0 = vpop.eup %1158  ;;  %v551_v35 = vmul.f32 1.442695, %v544_v61 }
 0x19d   : > { %v589_v39 = vmul.f32 %v1377_v0, %v585_v38 }
 0x19e   : > { %620 = vperm.xlu1 %1157, %v1377_v0  }
 0x20d   : > { %v556_v3 = vpop.permute.xlu0 %555 }
 0x20e   : > { %v573_v5 = vsub.f32 %v1337_v22, %v556_v3 }
 0x210   : > { %v577_v6 = vmul.f32 1.442695, %v573_v5 }
 0x211   : > { %v561_v7 = vpop.permute.xlu1 %560 }
 0x212   : > { %1160 = vpow2.f32 %v577_v6  ;;  %v574_v8 = vsub.f32 %v1339_v24, %v561_v7 }
 0x214   : > { %v579_v9 = vmul.f32 1.442695, %v574_v8 }
 0x215   : > { %v566_v10 = vpop.permute.xlu1 %565 }
 0x216   : > { %1162 = vpow2.f32 %v579_v9  ;;  %v575_v11 = vsub.f32 %v1345_v34, %v566_v10  ;;  %v617_v9 = vld [vmem:[#allocation4 + $0x18] sm:$0xff] }
 0x218   : > { %v581_v12 = vmul.f32 1.442695, %v575_v11 }
 0x219   : > { %v571_v13 = vpop.permute.xlu1 %570 }
 0x21a   : > { %1164 = vpow2.f32 %v581_v12  ;;  %v576_v14 = vsub.f32 %v1347_v36, %v571_v13 }
 0x21c   : > { %v1161_v16 = vpop.eup %1160  ;;  %v583_v17 = vmul.f32 1.442695, %v576_v14 }
 0x21d   : > { %v593_v18 = vsel %vm336_vm2, %v1161_v16, 0.0  ;;  %v642_v19 = vpack.c.bf16 %v1161_v16, %v1161_v16  ;;  %v621_v37 = vpop.permute.xlu1 %620 }
 0x21e   : > { %1166 = vpow2.f32 %v583_v17  ;;  %594 = vadd.xlane.f32.xlu1 %v593_v18  ;;  %v638_v56 = vmul.f32 %v621_v37, %v614_v55 }
 0x21f   : > { %1102 = vmatmul.mubr.msk.bf16.vlgmr.msra.gmra.mrb[8].mxu0 %vm336_vm2, %v642_v19  ;;  %1168 = vpow2.f32 %v549_v23 }
 0x220   : > { %v1163_v22 = vpop.eup %1162  ;;  %1112 = vmatpush3.bf16.msra.mxu0 %v743_v20  ;;  %1113 = vmatprep.mubr.msk.bf16.mxu0 %vm1211_vm3, %v1210_v4  ;;  %1170 = vpow2.f32 %v547_v30 }
 0x221   : > { %v596_v24 = vsel %vm336_vm2, %v1163_v22, 0.0  ;;  %v643_v25 = vpack.c.bf16 %v1163_v22, %v1163_v22  ;;  %1172 = vpow2.f32 %v551_v35 }
 0x222   : > { %597 = vadd.xlane.f32.xlu0 %v596_v24 }
 0x223   : > { %1108 = vmatmul.mubr.msk.bf16.vlgmr.msra.gmra.mrb[8].mxu1 %vm336_vm2, %v643_v25  ;;  %v1213_v25 = vmov (!%p1050_p9), 0  }
 0x224   : > { %v1165_v27 = vpop.eup %1164  ;;  %1118 = vmatpush3.bf16.msra.mxu1 %v789_v26  ;;  %1119 = vmatprep.mubr.msk.bf16.mxu1 %vm1211_vm3, %v1210_v4 }
 0x225   : > { %v644_v28 = vpack.c.bf16 %v1165_v27, %v1165_v27  ;;  %v599_v34 = vsel %vm336_vm2, %v1165_v27, 0.0 }
 0x227   : > { %1114 = vmatmul.mubr.msk.bf16.vlgmr.msra.gmra.mrb[12].mxu0 %vm336_vm2, %v644_v28 }
 0x228   : > { %v1167_v29 = vpop.eup %1166 }
 0x229   : > { %v645_v31 = vpack.c.bf16 %v1167_v29, %v1167_v29  ;;  %v1169_v32 = vpop.eup %1168  ;;  %v602_v4 = vsel %vm336_vm2, %v1167_v29, 0.0 }
 0x22a   : > { %v1171_v33 = vpop.eup %1170  ;;  %v591_v48 = vmul.f32 %v1169_v32, %v587_v47 }
 0x22b   : > { %1120 = vmatmul.mubr.msk.bf16.vlgmr.msra.gmra.mrb[12].mxu1 %vm336_vm2, %v645_v31  ;;  %v1173_v36 = vpop.eup %1172  ;;  %v590_v43 = vmul.f32 %v1171_v33, %v586_v41 }
 0x22c   : > { %v592_v52 = vmul.f32 %v1173_v36, %v588_v50 }
 0x22f   : > { %630 = vperm.xlu1 %1157, %v1169_v32  }
 0x238   : > { %625 = vperm.xlu0 %1156, %v1171_v33  }
 0x23c   : > { %1174 = vset.pattern.permute.xlu0 (!%p1050_p9), %v1213_v25 }
 0x253   : > { %600 = vadd.xlane.f32.xlu1 %v599_v34 }
 0x257   : > { %603 = vadd.xlane.f32.xlu1 %v602_v4 }
 0x268   : > { %635 = vperm.xlu1 %1157, %v1173_v36  }
 0x26c   : > { %1175 = vset.pattern.permute.xlu1 (!%p1050_p9), %v1213_v25 }
 0x2ab   : > { %v595_v40 = vpop.xlane.xlu1 %594 }
 0x2ac   : > { %v605_v42 = vadd.f32 %v595_v40, %v589_v39 }
 0x2ae   : > { %610 = vst.msk [vmem:[#allocation3] sm:$0xff] %vm609_vm7, %v605_v42 }
 0x2af   : > { %v598_v44 = vpop.xlane.xlu0 %597  ;;  %v631_v46 = vpop.permute.xlu1 %630 }
 0x2b0   : > { %v606_v45 = vadd.f32 %v598_v44, %v590_v43  ;;  %v640_v7 = vmul.f32 %v631_v46, %v616_v1 }
 0x2b2   : > { %611 = vst.msk [vmem:[#allocation3 + $0x8] sm:$0xff] %vm609_vm7, %v606_v45 }
 0x2b5   : > { %v846_v26 = vld [vmem:[#allocation3] sm:$0xff] (!%p1050_p9) }
 0x2b7   : > { %v626_v58 = vpop.permute.xlu0 %625 }
 0x2b8   : > { %v639_v63 = vmul.f32 %v626_v58, %v615_v57 }
 0x2b9   : > { %v847_v22 = vld [vmem:[#allocation3 + $0x8] sm:$0xff] (!%p1050_p9) }
 0x2ba   : > { %1176 = vrcp.f32 (!%p1050_p9), %v847_v22 }
 0x2c4   : > { %v1177_v27 = vpop.eup (!%p1050_p9), %1176 }
 0x2c5   : > { %865 = vperm.xlu0 (!%p1050_p9), %1174, %v1177_v27  }
 0x2e0   : > { %v601_v49 = vpop.xlane.xlu1 %600 }
 0x2e1   : > { %v607_v51 = vadd.f32 %v601_v49, %v591_v48 }
 0x2e3   : > { %612 = vst.msk [vmem:[#allocation3 + $0x10] sm:$0xff] %vm609_vm7, %v607_v51 }
 0x2e4   : > { %v604_v53 = vpop.xlane.xlu1 %603 }
 0x2e5   : > { %v608_v54 = vadd.f32 %v604_v53, %v592_v52 }
 0x2e7   : > { %613 = vst.msk [vmem:[#allocation3 + $0x18] sm:$0xff] %vm609_vm7, %v608_v54 }
 0x2e8   : > { %v636_v10 = vpop.permute.xlu1 %635 }
 0x2e9   : > { %v641_v15 = vmul.f32 %v636_v10, %v617_v9 }
 0x2ea   : > { %v848_v24 = vld [vmem:[#allocation3 + $0x10] sm:$0xff] (!%p1050_p9) }
 0x2ee   : > { %v849_v23 = vld [vmem:[#allocation3 + $0x18] sm:$0xff] (!%p1050_p9) }
 0x2ef   : > { %1178 = vrcp.f32 (!%p1050_p9), %v849_v23 }
 0x2f0   : > { %1180 = vrcp.f32 (!%p1050_p9), %v848_v24 }
 0x2f1   : > { %1182 = vrcp.f32 (!%p1050_p9), %v846_v26 }
 0x2f2   : > { %v687_v59 = vpop.f32.mrb[8].mxu0 }
 0x2f3   : > { %v831_v60 = vadd.f32 %v687_v59, %v638_v56  ;;  %v1103_v61 = vpop.f32.mrb[9].mxu0 }
 0x2f4   : > { %v690_v62 = vpop.f32.mrb[10].mxu0 }
 0x2f5   : > { %835 = vst.msk [vmem:[#allocation4] sm:$0xff] %vm336_vm2, %v831_v60  ;;  %v1104_v0 = vpop.f32.mrb[11].mxu0 }
 0x2f6   : > { %v733_v2 = vpop.f32.mrb[8].mxu1 }
 0x2f7   : > { %v832_v3 = vadd.f32 %v733_v2, %v639_v63  ;;  %v1109_v5 = vpop.f32.mrb[9].mxu1 }
 0x2f8   : > { %v736_v6 = vpop.f32.mrb[10].mxu1 }
 0x2f9   : > { %836 = vst.msk [vmem:[#allocation4 + $0x8] sm:$0xff] %vm336_vm2, %v832_v3  ;;  %v1110_v8 = vpop.f32.mrb[11].mxu1  ;;  %v1179_v28 = vpop.eup (!%p1050_p9), %1178 }
 0x2fa   : > { %v779_v11 = vpop.f32.mrb[12].mxu0  ;;  %v1181_v29 = vpop.eup (!%p1050_p9), %1180  ;;  %875 = vperm.xlu1 (!%p1050_p9), %1175, %v1179_v28  }
 0x2fb   : > { %v833_v12 = vadd.f32 %v779_v11, %v640_v7  ;;  %v1115_v13 = vpop.f32.mrb[13].mxu0  ;;  %845 = sbr.rel (%p1050_p9) target bundleno = 1012 (0x3f4), region = 40  ;;  %v1183_v30 = vpop.eup (!%p1050_p9), %1182  ;;  %870 = vperm.xlu0 (!%p1050_p9), %1174, %v1181_v29  }
 0x2fc   : > { %v782_v14 = vpop.f32.mrb[14].mxu0  ;;  %v854_v38 = vld [vmem:[#allocation4] sm:$0xff] (!%p1050_p9) }
 0x2fd   : > { %837 = vst.msk [vmem:[#allocation4 + $0x10] sm:$0xff] %vm336_vm2, %v833_v12  ;;  %v1116_v16 = vpop.f32.mrb[15].mxu0 }
 0x2fe   : > { %v825_v17 = vpop.f32.mrb[12].mxu1  ;;  %860 = vperm.xlu1 (!%p1050_p9), %1175, %v1183_v30  }
 0x2ff   : > { %v834_v18 = vadd.f32 %v825_v17, %v641_v15  ;;  %v1121_v19 = vpop.f32.mrb[13].mxu1 }
 0x300   : > { %v828_v20 = vpop.f32.mrb[14].mxu1  ;;  %v855_v31 = vld [vmem:[#allocation4 + $0x8] sm:$0xff] (!%p1050_p9) }
 0x301   : > { %838 = vst.msk [vmem:[#allocation4 + $0x18] sm:$0xff] %vm336_vm2, %v834_v18  ;;  %v1122_v21 = vpop.f32.mrb[15].mxu1 }
 0x304   : > { %v856_v36 = vld [vmem:[#allocation4 + $0x10] sm:$0xff] }
 0x308   : > { %v857_v32 = vld [vmem:[#allocation4 + $0x18] sm:$0xff] }
 0x344   : > { %v866_v33 = vpop.permute.xlu0 %865 }
 0x345   : > { %v879_v34 = vmul.f32 %v866_v33, %v855_v31 }
 0x347   : > { %v1056_v37 = vpack.c.bf16 %v879_v34, %v879_v34 }
 0x349   : > { %891 = vrot.lane.b32.xlu0 %v1056_v37, %s1214_s1 }
 0x379   : > { %v876_v4 = vpop.permute.xlu1 %875 }
 0x37a   : > { %v881_v35 = vmul.f32 %v876_v4, %v857_v32  ;;  %v871_v39 = vpop.permute.xlu0 %870 }
 0x37b   : > { %v880_v41 = vmul.f32 %v871_v39, %v856_v36 }
 0x37c   : > { %v1058_v40 = vpack.c.bf16 %v881_v35, %v881_v35 }
 0x37d   : > { %v861_v42 = vpop.permute.xlu1 %860  ;;  %v1057_v44 = vpack.c.bf16 %v880_v41, %v880_v41 }
 0x37e   : > { %v878_v43 = vmul.f32 %v861_v42, %v854_v38  ;;  %907 = vrot.lane.b32.xlu0 %v1058_v40, %s1216_s26 }
 0x37f   : > { %899 = vrot.lane.b32.xlu1 %v1057_v44, %s1215_s25 }
 0x380   : > { %v882_v45 = vpack.c.bf16 %v878_v43, %v878_v43 }
 0x382   : > { %887 = vst.msk [vmem:[%s1297_s21] sm:$0xf] %vm886_vm9, %v882_v45 }
 0x3bb   : > { %v892_v46 = vpop.permute.xlu0 %891 }
 0x3bc   : > { %895 = vst.msk [vmem:[%s1297_s21] sm:$0xf] %vm894_vm10, %v892_v46 }
 0x3f0   : > { %v908_v48 = vpop.permute.xlu0 %907 }
 0x3f1   : > { %v900_v47 = vpop.permute.xlu1 %899 }
 0x3f2   : > { %903 = vst.msk [vmem:[%s1297_s21] sm:$0xf] %vm902_vm11, %v900_v47 }
 0x3f3   : > { %911 = vst.msk [vmem:[%s1297_s21] sm:$0xf] %vm910_vm12, %v908_v48 }
 0x3f4 PF: > { %s17_s24 = sadd.s32 1, %s1206_s24   ;;  %s1440_s22 = smov %s1202_s23 }
 0x3f5   : > { %p14_p10 = scmp.ge.s32.totalorder %s17_s24, 4   ;;  %s1441_s23 = smov %s1443_s0 }
 0x3f7   :  { %16 = sbr.rel (!%p14_p10) target bundleno = 3 (0x3), region = 76 }

// kernel: gpt_forward.24
= control target key start
LH: loop header
LB: loop body
LE: loop exit
PB: predicated region body
PF: predicated region fallthrough
CT: control target
= control target key end

     0   :  { %v153_v0 = vmov 0.0   ;;  %vm154_vm0 = vmmov 0   ;;  %vm46_vm1 = vcmask 261120   ;;  %s190_s1 = inlined_call_operand.vmem [shape: bf16[32,128], index: 1, kind: input, shape index: {}]   ;;  %s191_s0 = inlined_call_operand.vmem [shape: bf16[16,32], index: 0, kind: input, shape index: {}]   ;;  %s192_s2 = inlined_call_operand.vmem [shape: f32[1,128], index: 2, kind: input, shape index: {}]   ;;  %s193_s3 = inlined_call_operand.vmem [shape: bf16[16,128], index: 3, kind: output, shape index: {}]  }
   0x1   :  { %140 = vmatprep.subr.bf16.mxu0 %v153_v0  ;;  %v150_v1 = vld [vmem:[%s190_s1] sm:$0xff]   ;;  %144 = vmatprep.mubr.msk.bf16.mxu0 %vm154_vm0, %v153_v0  ;;  %v151_v2 = vld [vmem:[%s190_s1 + $0x8] sm:$0xff]  }
   0x2   :  { %141 = vmatpush3.bf16.msra.mxu0 %v150_v1  ;;  %v152_v3 = vld [vmem:[%s191_s0] sm:$0xff]  }
   0x3   :  { %142 = vmatprep.subr.bf16.mxu0 %v153_v0  ;;  %v127_v5 = vld [vmem:[%s192_s2] ss:$0 sm:$0xff] }
   0x6   :  { %143 = vmatpush3.bf16.msra.mxu0 %v151_v2 }
   0x9   :  { %145 = vmatmul.mubr.msk.bf16.vlgmr.msra.gmra.mrb[0].mxu0 %vm46_vm1, %v152_v3 }
  0xdc   :  { %v84_v4 = vpop.f32.mrb[0].mxu0 }
  0xdd   :  { %v146_v6 = vpop.f32.mrb[1].mxu0  ;;  %v107_v8 = vadd.f32 %v127_v5, %v84_v4 }
  0xde   :  { %v87_v7 = vpop.f32.mrb[2].mxu0 }
  0xdf   :  { %v108_v9 = vadd.f32 %v127_v5, %v87_v7  ;;  %v147_v10 = vpop.f32.mrb[3].mxu0 }
  0xe1   :  { %v135_v11 = vpack.c.bf16 %v108_v9, %v107_v8 }
  0xe3   :  { %136 = vst [vmem:[%s193_s3] sm:$0xff] %v135_v11  }

// kernel: gpt_forward.22
= control target key start
LH: loop header
LB: loop body
LE: loop exit
PB: predicated region body
PF: predicated region fallthrough
CT: control target
= control target key end

     0   :  { %vm16_vm0 = vcmask 261120   ;;  %v124_v0 = vmov 0.0   ;;  %vm125_vm1 = vmmov 0   ;;  %s163_s1 = inlined_call_operand.vmem [shape: bf16[32,32], index: 1, kind: input, shape index: {}]   ;;  %s164_s0 = inlined_call_operand.vmem [shape: bf16[16,32], index: 0, kind: input, shape index: {}]   ;;  %s165_s2 = inlined_call_operand.vmem [shape: f32[16,32], index: 2, kind: output, shape index: {}]  }
   0x1   :  { %111 = vmatprep.subr.bf16.mxu0 %v124_v0  ;;  %v121_v1 = vld [vmem:[%s163_s1] sm:$0xff]   ;;  %115 = vmatprep.mubr.msk.bf16.mxu0 %vm125_vm1, %v124_v0  ;;  %17 = vst.msk [vmem:[#allocation2] sm:$0xff] %vm16_vm0, %v124_v0  ;;  %18 = vst.msk [vmem:[#allocation2 + $0x8] sm:$0xff] %vm16_vm0, %v124_v0  ;;  %v122_v2 = vld [vmem:[%s163_s1 + $0x8] sm:$0xff]  }
   0x2   :  { %112 = vmatpush3.bf16.msra.mxu0 %v121_v1  ;;  %v123_v3 = vld [vmem:[%s164_s0] sm:$0xff]  }
   0x3   :  { %113 = vmatprep.subr.bf16.mxu0 %v124_v0 }
   0x6   :  { %114 = vmatpush3.bf16.msra.mxu0 %v122_v2 }
   0x8   :  { %v19_v4 = vld [vmem:[#allocation2] sm:$0xff]  ;;  %v20_v6 = vld [vmem:[#allocation2 + $0x8] sm:$0xff] }
   0x9   :  { %116 = vmatmul.mubr.msk.bf16.vlgmr.msra.gmra.mrb[0].mxu0 %vm16_vm0, %v123_v3 }
  0xdc   :  { %v82_v5 = vpop.f32.mrb[0].mxu0 }
  0xdd   :  { %v89_v7 = vadd.f32 %v82_v5, %v19_v4  ;;  %v117_v8 = vpop.f32.mrb[1].mxu0 }
  0xde   :  { %v85_v9 = vpop.f32.mrb[2].mxu0 }
  0xdf   :  { %91 = vst.msk [vmem:[#allocation2] sm:$0xff] %vm16_vm0, %v89_v7  ;;  %v90_v10 = vadd.f32 %v85_v9, %v20_v6  ;;  %v118_v11 = vpop.f32.mrb[3].mxu0 }
  0xe1   :  { %92 = vst.msk [vmem:[#allocation2 + $0x8] sm:$0xff] %vm16_vm0, %v90_v10 }
  0xe6   :  { %v96_v12 = vld [vmem:[#allocation2] sm:$0xff] }
  0xe7   :  { %98 = vst.msk [vmem:[%s165_s2] sm:$0xff] %vm16_vm0, %v96_v12 }
  0xe8   :  { %v97_v13 = vld [vmem:[#allocation2 + $0x8] sm:$0xff] }
  0xe9   :  { %99 = vst.msk [vmem:[%s165_s2 + $0x8] sm:$0xff] %vm16_vm0, %v97_v13 }

// kernel: gpt_forward.25
= control target key start
LH: loop header
LB: loop body
LE: loop exit
PB: predicated region body
PF: predicated region fallthrough
CT: control target
= control target key end

     0   :  { %vm19_vm0 = vcmask 261120   ;;  %v212_v0 = vmov 0.0   ;;  %vm213_vm1 = vmmov 0   ;;  %s276_s1 = inlined_call_operand.vmem [shape: bf16[128,32], index: 1, kind: input, shape index: {}]   ;;  %s277_s0 = inlined_call_operand.vmem [shape: bf16[16,128], index: 0, kind: input, shape index: {}]   ;;  %s278_s2 = inlined_call_operand.vmem [shape: f32[1,32], index: 2, kind: input, shape index: {}]   ;;  %s279_s3 = inlined_call_operand.vmem [shape: f32[16,32], index: 3, kind: output, shape index: {}]  }
   0x1   :  { %181 = vmatprep.subr.bf16.mxu0 %v212_v0  ;;  %v203_v1 = vld [vmem:[%s276_s1] sm:$0xff]   ;;  %197 = vmatprep.mubr.msk.bf16.mxu0 %vm213_vm1, %v212_v0  ;;  %20 = vst.msk [vmem:[#allocation2] sm:$0xff] %vm19_vm0, %v212_v0  ;;  %21 = vst.msk [vmem:[#allocation2 + $0x8] sm:$0xff] %vm19_vm0, %v212_v0  ;;  %v204_v2 = vld [vmem:[%s276_s1 + $0x8] sm:$0xff]  }
   0x2   :  { %182 = vmatpush3.bf16.msra.mxu0 %v203_v1  ;;  %v205_v3 = vld [vmem:[%s276_s1 + $0x10] sm:$0xff]   ;;  %v206_v4 = vld [vmem:[%s276_s1 + $0x18] sm:$0xff]   ;;  %v207_v5 = vld [vmem:[%s276_s1 + $0x20] sm:$0xff]  }
   0x3   :  { %183 = vmatprep.subr.bf16.mxu0 %v212_v0  ;;  %v208_v6 = vld [vmem:[%s276_s1 + $0x28] sm:$0xff]   ;;  %v209_v7 = vld [vmem:[%s276_s1 + $0x30] sm:$0xff]   ;;  %v210_v8 = vld [vmem:[%s276_s1 + $0x38] sm:$0xff]  }
   0x4   :  { %v211_v9 = vld [vmem:[%s277_s0] sm:$0xff]  }
   0x5   :  { %v171_v18 = vld [vmem:[%s278_s2] ss:$0 sm:$0xff] }
   0x6   :  { %184 = vmatpush3.bf16.msra.mxu0 %v204_v2 }
   0x7   :  { %185 = vmatprep.subr.bf16.mxu0 %v212_v0 }
   0x8   :  { %v22_v10 = vld [vmem:[#allocation2] sm:$0xff]  ;;  %v23_v12 = vld [vmem:[#allocation2 + $0x8] sm:$0xff] }
   0xa   :  { %186 = vmatpush3.bf16.msra.mxu0 %v205_v3 }
   0xb   :  { %187 = vmatprep.subr.bf16.mxu0 %v212_v0 }
   0xe   :  { %188 = vmatpush3.bf16.msra.mxu0 %v206_v4 }
   0xf   :  { %189 = vmatprep.subr.bf16.mxu0 %v212_v0 }
  0x12   :  { %190 = vmatpush3.bf16.msra.mxu0 %v207_v5 }
  0x13   :  { %191 = vmatprep.subr.bf16.mxu0 %v212_v0 }
  0x16   :  { %192 = vmatpush3.bf16.msra.mxu0 %v208_v6 }
  0x17   :  { %193 = vmatprep.subr.bf16.mxu0 %v212_v0 }
  0x1a   :  { %194 = vmatpush3.bf16.msra.mxu0 %v209_v7 }
  0x1b   :  { %195 = vmatprep.subr.bf16.mxu0 %v212_v0 }
  0x1e   :  { %196 = vmatpush3.bf16.msra.mxu0 %v210_v8 }
  0x21   :  { %198 = vmatmul.mubr.bf16.vlgmr.msra.gmra.mrb[0].mxu0 %v211_v9 }
  0xf4   :  { %v130_v11 = vpop.f32.mrb[0].mxu0 }
  0xf5   :  { %v137_v13 = vadd.f32 %v130_v11, %v22_v10  ;;  %v199_v14 = vpop.f32.mrb[1].mxu0 }
  0xf6   :  { %v133_v15 = vpop.f32.mrb[2].mxu0 }
  0xf7   :  { %140 = vst.msk [vmem:[#allocation2] sm:$0xff] %vm19_vm0, %v137_v13  ;;  %v138_v16 = vadd.f32 %v133_v15, %v23_v12  ;;  %v200_v17 = vpop.f32.mrb[3].mxu0 }
  0xf9   :  { %141 = vst.msk [vmem:[#allocation2 + $0x8] sm:$0xff] %vm19_vm0, %v138_v16 }
  0xfe   :  { %v145_v19 = vld [vmem:[#allocation2] sm:$0xff] }
  0xff   :  { %v154_v20 = vadd.f32 %v171_v18, %v145_v19 }
 0x100   :  { %v146_v21 = vld [vmem:[#allocation2 + $0x8] sm:$0xff] }
 0x101   :  { %156 = vst.msk [vmem:[%s279_s3] sm:$0xff] %vm19_vm0, %v154_v20  ;;  %v155_v22 = vadd.f32 %v171_v18, %v146_v21 }
 0x103   :  { %157 = vst.msk [vmem:[%s279_s3 + $0x8] sm:$0xff] %vm19_vm0, %v155_v22 }

// kernel: gpt_forward.34
= control target key start
LH: loop header
LB: loop body
LE: loop exit
PB: predicated region body
PF: predicated region fallthrough
CT: control target
= control target key end

     0   :  { %vm10_vm0 = vcmask 254976   ;;  %vm20_vm1 = vcmask 253952   ;;  %s44_s0 = inlined_call_operand.vmem [shape: f32[2,32], index: 0, kind: input, shape index: {}]   ;;  %s45_s1 = inlined_call_operand.vmem [shape: bf16[2,32], index: 1, kind: output, shape index: {}]  }
   0x1   :  { %v8_v0 = vld [vmem:[%s44_s0] sm:$0x3] }
   0x2   :  { %v9_v1 = vmul.f32 %v8_v0, %v8_v0 }
   0x4   :  { %v11_v2 = vsel %vm10_vm0, %v9_v1, 0.0 }
   0x5   :  { %12 = vadd.xlane.f32.xlu0 %v11_v2 }
  0x92   :  { %v13_v3 = vpop.xlane.xlu0 %12 }
  0x93   :  { %v15_v4 = vmul.f32 0.03125, %v13_v3 }
  0x95   :  { %v16_v5 = vadd.f32 1.1920929e-07, %v15_v4 }
  0x97   :  { %26 = vrsqrt.f32 %v16_v5 }
  0xa1   :  { %v27_v6 = vpop.eup %26 }
  0xa2   :  { %v18_v7 = vmul.f32 %v27_v6, %v8_v0 }
  0xa4   :  { %v19_v8 = vpack.c.bf16 %v18_v7, %v18_v7 }
  0xa6   :  { %21 = vst.msk [vmem:[%s45_s1] sm:$0x1] %vm20_vm1, %v19_v8 }

// kernel: gpt_forward.35
= control target key start
LH: loop header
LB: loop body
LE: loop exit
PB: predicated region body
PF: predicated region fallthrough
CT: control target
= control target key end

     0   :  { %v146_v1 = vmov 0.0   ;;  %vm147_vm0 = vmmov 0   ;;  %vm17_vm1 = vcmask 517120   ;;  %s188_s0 = inlined_call_operand.vmem [shape: bf16[2,32], index: 0, kind: input, shape index: {}]   ;;  %s189_s1 = inlined_call_operand.vmem [shape: bf16[32,64], index: 1, kind: input, shape index: {}]   ;;  %s190_s2 = inlined_call_operand.hbm [shape: f32[2,64], index: 2, kind: output, shape index: {}]  }
   0x1   :  { %v120_v0 = vld [vmem:[%s189_s1] sm:$0xff]   ;;  %109 = vmatprep.subr.bf16.mxu0 %v146_v1  ;;  %v121_v2 = vld [vmem:[%s189_s1 + $0x8] sm:$0xff]   ;;  %113 = vmatprep.mubr.msk.bf16.mxu0 %vm147_vm0, %v146_v1 }
   0x2   :  { %110 = vmatpush3.bf16.msra.mxu0 %v120_v0 }
   0x3   :  { %7 = vsyncpa [#allocation4], 0  ;;  %111 = vmatprep.subr.bf16.mxu0 %v146_v1  ;;  %18 = vst.msk [vmem:[#allocation2] sm:$0x3] %vm17_vm1, %v146_v1  ;;  %v20_v3 = vld [vmem:[%s188_s0] sm:$0x1] }
   0x4   :  { %vm37_vm2 = vcmask 261120   ;;  %s148_s1 = smov [#allocation3]  }
   0x5   :  { %s95_s15 = sshll.u32 %s148_s1, 4  ;;  %s96_s15 = int_to_ptr.vmem [resolvable:$true] %s95_s15 }
   0x6   :  { %112 = vmatpush3.bf16.msra.mxu0 %v121_v2  ;;  %s122_s16 = scalar_lea.vmem %s96_s15, 32  ;;  %p127_p1 = scmp.lt.s32.totalorder %s96_s15, %s96_s15 }
   0x7   :  { %p123_p0 = scmp.ne.s32.totalorder %s96_s15, %s122_s16  ;;  %p128_p2 = scmp.lt.s32.totalorder %s122_s16, %s122_s16 }
   0x9   :  { %114 = vmatmul.mubr.msk.bf16.vlgmr.msra.gmra.mrb[0].mxu0 %vm37_vm2, %v20_v3  ;;  %p129_p3 = por %p128_p2, %p127_p1 }
   0xa   :  { %v19_v4 = vld [vmem:[#allocation2] sm:$0x3] }
   0xb   :  { %p130_p4 = pnand %p129_p3, %p123_p0 }
  0xdc   :  { %v75_v5 = vpop.f32.mrb[0].mxu0 }
  0xdd   :  { %v81_v6 = vadd.f32 %v75_v5, %v19_v4  ;;  %v115_v7 = vpop.f32.mrb[1].mxu0 }
  0xde   :  { %v78_v8 = vpop.f32.mrb[2].mxu0 }
  0xdf   :  { %83 = vst.msk [vmem:[#allocation2] sm:$0x3] %vm17_vm1, %v81_v6  ;;  %v116_v9 = vpop.f32.mrb[3].mxu0 }
  0xe6   :  { %v87_v10 = vld [vmem:[#allocation2] sm:$0x3] }
  0xe7   :  { %88 = vst.msk [vmem:[#allocation3] sm:$0x3] %vm17_vm1, %v87_v10 }
  0xe8   :  { %133 = shalt.err (!%p130_p4)
}
  0xe9   :  { %s134_s18 = scalar_lea.hbm %s190_s2, 32 }
  0xea   :  { %p135_p5 = scmp.ne.s32.totalorder %s190_s2, %s134_s18  ;;  %p138_p6 = scmp.lt.u32.totalorder %s134_s18, %s190_s2 }
  0xec   :  { %p140_p7 = pnand %p138_p6, %p135_p5 }
  0xee   :  { %143 = shalt.err (!%p140_p7)
}
  0xef   :  { %98 = dma.vmem_to_hbm [thread:$0]  %s96_s15, 32, %s190_s2, [#allocation4]  }
  0xf0   :  { %144 = dma.done.wait [#allocation4], 32  }
  0xf1   :  { %145 = vsyncadd [#allocation4], 4294967264 }
  0xf2   :  { %102 = vsyncpa [#allocation4], 1 }

</bundles_post_ra>
